<compile_context>
chip_gen: v7x
topology: tpu7x:2x2x1
jax: 0.10.0
libtpu: 0.0.40
codegen_flags: <defaults>
</compile_context>

<pallas_src>
import functools

import jax
import jax.numpy as jnp
from jax.experimental import pallas as pl
from jax.experimental.pallas import tpu as pltpu

BN_EPS = 1e-5
LANE = 128          # planes are zero-padded up to a full 128-lane vreg width


# ------------------------------- fused kernel ------------------------------ #

def _bottleneck_kernel(x_ref, w1_ref, w2_ref, w3_ref,
                       s1_ref, b1_ref, s2_ref, b2_ref, s3_ref, b3_ref,
                       o_ref, q_ref, *, H, W):
    """One image per grid step, NCHW with spatial flattened.

    x_ref : (1, Cin, H*W)        f32 input block (free reshape of NCHW)
    w1    : (Cin, Pp)            bf16 (Pp = padded planes = 128)
    w2    : (3, 3*Pp, Pp)        bf16, row block dx*Pp:(dx+1)*Pp of w2[dy] = conv2[dy,dx]
    w3    : (Pp, Cout)           bf16
    s*/b* : (1, Pp) / (1, Cout)  f32 folded BatchNorm scale / bias (zero-padded)
    o_ref : (1, Cout, H*W)       f32 output block
    q_ref : (H+2, W, 3*Pp)       bf16 VMEM scratch: dx-im2col of stage-1 output
    """
    HW = H * W
    Pp = w1_ref.shape[1]
    Cout = w3_ref.shape[1]

    # ---- NCHW -> (HW, C): one in-kernel f32 transpose (XLU; no HBM pass) ----
    x_chw = x_ref[0]                         # (Cin, HW) f32
    x_hwc = jnp.transpose(x_chw)             # (HW, Cin) f32; also the residual

    # ---- stage 1: conv1 (1x1) + bn1 + relu ----------------------------------
    h1 = jnp.dot(x_hwc.astype(jnp.bfloat16), w1_ref[...],
                 preferred_element_type=jnp.float32)
    h1 = jnp.maximum(h1 * s1_ref[...] + b1_ref[...], 0.0)       # (HW, Pp) f32

    # ---- build dx-im2col scratch: q[h+1, w, dx*Pp + c] = h1[h, w+dx-1, c] ----
    # W-shifts are done on the flattened (HW, Pp) array; rows that wrap across an
    # image row are zeroed by the column mask.  All scratch writes are aligned
    # (outer-dim row range, lane-tile channel blocks).
    zrow = jnp.zeros((1, Pp), jnp.float32)
    sdown = jnp.concatenate([zrow, h1[:HW - 1, :]], axis=0).reshape(H, W, Pp)  # h1[h, w-1]
    sup = jnp.concatenate([h1[1:, :], zrow], axis=0).reshape(H, W, Pp)         # h1[h, w+1]
    wcol = jax.lax.broadcasted_iota(jnp.int32, (H, W, Pp), 1)

    q_ref[0] = jnp.zeros((W, 3 * Pp), jnp.bfloat16)         # top H-halo row (every iter:
    q_ref[H + 1] = jnp.zeros((W, 3 * Pp), jnp.bfloat16)     # safe under megacore split)
    q_ref[1:H + 1, :, 0 * Pp:1 * Pp] = jnp.where(wcol > 0, sdown, 0.0).astype(jnp.bfloat16)
    q_ref[1:H + 1, :, 1 * Pp:2 * Pp] = h1.reshape(H, W, Pp).astype(jnp.bfloat16)
    q_ref[1:H + 1, :, 2 * Pp:3 * Pp] = jnp.where(wcol < W - 1, sup, 0.0).astype(jnp.bfloat16)

    # ---- stage 2: conv2 (3x3) as 3 dots with K = 3*Pp, + bn2 + relu ---------
    acc = jnp.dot(q_ref[0:H].reshape(HW, 3 * Pp), w2_ref[0],
                  preferred_element_type=jnp.float32)
    acc += jnp.dot(q_ref[1:H + 1].reshape(HW, 3 * Pp), w2_ref[1],
                   preferred_element_type=jnp.float32)
    acc += jnp.dot(q_ref[2:H + 2].reshape(HW, 3 * Pp), w2_ref[2],
                   preferred_element_type=jnp.float32)
    h2 = jnp.maximum(acc * s2_ref[...] + b2_ref[...], 0.0)      # (HW, Pp) f32

    # ---- stage 3: conv3 (1x1) + bn3 + residual add + relu -------------------
    h3 = jnp.dot(h2.astype(jnp.bfloat16), w3_ref[...],
                 preferred_element_type=jnp.float32)
    out_hwc = jnp.maximum(h3 * s3_ref[...] + b3_ref[...] + x_hwc, 0.0)
    # (HW, Cout) -> (Cout, HW): in-kernel transpose back to NCHW, lane-dense store.
    o_ref[...] = jnp.transpose(out_hwc).reshape(1, Cout, HW)


# --------------------------------- wrapper --------------------------------- #

def bottleneck_caffe_forward(x_nchw, pp):
    """NCHW entry point (stride=1, downsample=None). `pp` = padded params."""
    N, Cin, H, W = x_nchw.shape
    HW = H * W
    Pp = pp["w1"].shape[1]
    Cout = pp["w3"].shape[1]

    x_flat = x_nchw.reshape(N, Cin, HW)     # free reshape (NCHW is contiguous)
    kern = functools.partial(_bottleneck_kernel, H=H, W=W)

    out_flat = pl.pallas_call(
        kern,
        out_shape=jax.ShapeDtypeStruct((N, Cout, HW), jnp.float32),
        grid=(N,),
        in_specs=[
            pl.BlockSpec((1, Cin, HW), lambda n: (n, 0, 0)),      # x
            pl.BlockSpec((Cin, Pp), lambda n: (0, 0)),            # w1
            pl.BlockSpec((3, 3 * Pp, Pp), lambda n: (0, 0, 0)),   # w2 (dy, dx*Pp+ci, co)
            pl.BlockSpec((Pp, Cout), lambda n: (0, 0)),           # w3
            pl.BlockSpec((1, Pp), lambda n: (0, 0)),              # s1
            pl.BlockSpec((1, Pp), lambda n: (0, 0)),              # b1
            pl.BlockSpec((1, Pp), lambda n: (0, 0)),              # s2
            pl.BlockSpec((1, Pp), lambda n: (0, 0)),              # b2
            pl.BlockSpec((1, Cout), lambda n: (0, 0)),            # s3
            pl.BlockSpec((1, Cout), lambda n: (0, 0)),            # b3
        ],
        out_specs=pl.BlockSpec((1, Cout, HW), lambda n: (n, 0, 0)),
        scratch_shapes=[pltpu.VMEM((H + 2, W, 3 * Pp), jnp.bfloat16)],
        compiler_params=pltpu.CompilerParams(
            dimension_semantics=("parallel",)),
    )(x_flat, pp["w1"], pp["w2"], pp["w3"],
      pp["s1"], pp["b1"], pp["s2"], pp["b2"], pp["s3"], pp["b3"])

    return out_flat.reshape(N, Cout, H, W)


def pad_params(p, planes, lane=LANE):
    """Zero-pad planes -> `lane` and pre-arrange conv2 weights for the 3-dot kernel."""
    P = planes
    Cin = p["w1"].shape[0]
    Cout = p["w3"].shape[1]
    bf = jnp.bfloat16

    w1 = jnp.zeros((Cin, lane), bf).at[:, :P].set(p["w1"].astype(bf))
    w2 = jnp.zeros((3, 3 * lane, lane), bf)
    for dy in range(3):
        for dx in range(3):
            w2 = w2.at[dy, dx * lane:dx * lane + P, :P].set(p["w2"][dy, dx].astype(bf))
    w3 = jnp.zeros((lane, Cout), bf).at[:P, :].set(p["w3"].astype(bf))

    def padc(v):  # (1, P) -> (1, lane); zero padding keeps padded channels exactly 0
        return jnp.zeros((1, lane), jnp.float32).at[:, :P].set(v)

    return {"w1": w1, "w2": w2, "w3": w3,
            "s1": padc(p["s1"]), "b1": padc(p["b1"]),
            "s2": padc(p["s2"]), "b2": padc(p["b2"]),
            "s3": p["s3"].astype(jnp.float32), "b3": p["b3"].astype(jnp.float32)}


# -------------------------------- reference -------------------------------- #

def _ref_forward(x_nchw, p):
    """Pure-JAX NCHW reference: bf16 products, f32 accumulation (same as kernel)."""
    def conv(x, w_oihw, pad=0):
        return jax.lax.conv_general_dilated(
            x.astype(jnp.bfloat16), w_oihw.astype(jnp.bfloat16),
            (1, 1), [(pad, pad), (pad, pad)],
            dimension_numbers=("NCHW", "OIHW", "NCHW"),
            preferred_element_type=jnp.float32)

    def bn(x, s, b):  # s/b are (1, C) f32
        return x * s[0][None, :, None, None] + b[0][None, :, None, None]

    # params store (Cin, Cout) / (ky, kx, Cin, Cout) -> convert to OIHW
    w1 = jnp.transpose(p["w1"], (1, 0))[:, :, None, None]
    w2 = jnp.transpose(p["w2"], (3, 2, 0, 1))
    w3 = jnp.transpose(p["w3"], (1, 0))[:, :, None, None]

    out = jax.nn.relu(bn(conv(x_nchw, w1), p["s1"], p["b1"]))
    out = jax.nn.relu(bn(conv(out, w2, pad=1), p["s2"], p["b2"]))
    out = bn(conv(out, w3), p["s3"], p["b3"])
    return jax.nn.relu(out + x_nchw)


# ---------------------------------- main ------------------------------------ #

def _fold_bn(key, c):
    k1, k2, k3, k4 = jax.random.split(key, 4)
    gamma = jax.random.uniform(k1, (c,), jnp.float32, 0.5, 1.5)
    beta = 0.1 * jax.random.normal(k2, (c,), jnp.float32)
    mean = 0.1 * jax.random.normal(k3, (c,), jnp.float32)
    var = jax.random.uniform(k4, (c,), jnp.float32, 0.5, 1.5)
    scale = gamma / jnp.sqrt(var + BN_EPS)
    bias = beta - mean * scale
    return scale[None, :], bias[None, :]


if __name__ == "__main__":
    planes = 32
    inplanes = planes * 4          # expansion = 4; identity residual needs Cin == Cout
    N, H, W = 2, 16, 16

    key = jax.random.PRNGKey(0)
    kx, kw1, kw2, kw3, kb1, kb2, kb3 = jax.random.split(key, 7)

    x = jax.random.normal(kx, (N, inplanes, H, W), jnp.float32)

    params = {
        "w1": 0.1 * jax.random.normal(kw1, (inplanes, planes), jnp.float32),
        "w2": 0.1 * jax.random.normal(kw2, (3, 3, planes, planes), jnp.float32),
        "w3": 0.1 * jax.random.normal(kw3, (planes, planes * 4), jnp.float32),
    }
    params["s1"], params["b1"] = _fold_bn(kb1, planes)
    params["s2"], params["b2"] = _fold_bn(kb2, planes)
    params["s3"], params["b3"] = _fold_bn(kb3, planes * 4)

    padded = jax.tree_util.tree_map(jax.block_until_ready, pad_params(params, planes))

    out = jax.jit(bottleneck_caffe_forward)(x, padded)
    out = jax.block_until_ready(out)

    ref = _ref_forward(x, params)
    assert out.shape == (N, inplanes, H, W)
    assert jnp.allclose(out, ref, atol=2e-2, rtol=2e-2), "mismatch vs reference"

    print("KERNEL_OK")
</pallas_src>

<mosaic_0001>
module attributes {stable_mosaic.version = 11 : i64} {
  func.func @_bottleneck_kernel(%arg0: i32, %arg1: memref<1x128x256xf32, #tpu.memory_space<vmem>>, %arg2: memref<128x128xbf16, #tpu.memory_space<vmem>>, %arg3: memref<3x384x128xbf16, #tpu.memory_space<vmem>>, %arg4: memref<128x128xbf16, #tpu.memory_space<vmem>>, %arg5: memref<1x128xf32, #tpu.memory_space<vmem>>, %arg6: memref<1x128xf32, #tpu.memory_space<vmem>>, %arg7: memref<1x128xf32, #tpu.memory_space<vmem>>, %arg8: memref<1x128xf32, #tpu.memory_space<vmem>>, %arg9: memref<1x128xf32, #tpu.memory_space<vmem>>, %arg10: memref<1x128xf32, #tpu.memory_space<vmem>>, %arg11: memref<1x128x256xf32, #tpu.memory_space<vmem>>, %arg12: memref<18x16x384xbf16, #tpu.memory_space<vmem>>) attributes {dimension_semantics = [#tpu.dimension_semantics<parallel>], iteration_bounds = array<i64: 2>, scalar_prefetch = 0 : i64, scratch_operands = 1 : i64, tpu.core_type = #tpu.core_type<tc>, window_params = [{transform_indices = @transform_0, window_bounds = array<i64: 1, 128, 256>}, {pipeline_mode = #tpu.pipeline_mode<synchronous>, transform_indices = @transform_1, window_bounds = array<i64: 128, 128>}, {pipeline_mode = #tpu.pipeline_mode<synchronous>, transform_indices = @transform_2, window_bounds = array<i64: 3, 384, 128>}, {pipeline_mode = #tpu.pipeline_mode<synchronous>, transform_indices = @transform_3, window_bounds = array<i64: 128, 128>}, {pipeline_mode = #tpu.pipeline_mode<synchronous>, transform_indices = @transform_4, window_bounds = array<i64: 1, 128>}, {pipeline_mode = #tpu.pipeline_mode<synchronous>, transform_indices = @transform_5, window_bounds = array<i64: 1, 128>}, {pipeline_mode = #tpu.pipeline_mode<synchronous>, transform_indices = @transform_6, window_bounds = array<i64: 1, 128>}, {pipeline_mode = #tpu.pipeline_mode<synchronous>, transform_indices = @transform_7, window_bounds = array<i64: 1, 128>}, {pipeline_mode = #tpu.pipeline_mode<synchronous>, transform_indices = @transform_8, window_bounds = array<i64: 1, 128>}, {pipeline_mode = #tpu.pipeline_mode<synchronous>, transform_indices = @transform_9, window_bounds = array<i64: 1, 128>}, {transform_indices = @transform_10, window_bounds = array<i64: 1, 128, 256>}]} {
    %c0 = arith.constant 0 : index
    %c0_0 = arith.constant 0 : index
    %c0_1 = arith.constant 0 : index
    %0 = vector.load %arg1[%c0, %c0_0, %c0_1] : memref<1x128x256xf32, #tpu.memory_space<vmem>>, vector<1x128x256xf32>
    %1 = vector.shape_cast %0 : vector<1x128x256xf32> to vector<128x256xf32>
    %2 = tpu.transpose %1, [1, 0] : vector<128x256xf32> -> vector<256x128xf32>
    %3 = arith.truncf %2 : vector<256x128xf32> to vector<256x128xbf16>
    %c0_2 = arith.constant 0 : index
    %c0_3 = arith.constant 0 : index
    %4 = vector.load %arg2[%c0_2, %c0_3] : memref<128x128xbf16, #tpu.memory_space<vmem>>, vector<128x128xbf16>
    %cst = arith.constant dense<0.000000e+00> : vector<256x128xf32>
    %5 = tpu.matmul %3, %4, %cst {dimension_numbers = #tpu.dot_dimension_numbers<[1], [0], [0], [1], [0, 0, 1, 1], [], []>} : vector<256x128xbf16>, vector<128x128xbf16>, vector<256x128xf32> -> vector<256x128xf32>
    %c0_4 = arith.constant 0 : index
    %c0_5 = arith.constant 0 : index
    %6 = vector.load %arg5[%c0_4, %c0_5] : memref<1x128xf32, #tpu.memory_space<vmem>>, vector<1x128xf32>
    %7 = vector.broadcast %6 : vector<1x128xf32> to vector<256x128xf32>
    %8 = arith.mulf %5, %7 : vector<256x128xf32>
    %c0_6 = arith.constant 0 : index
    %c0_7 = arith.constant 0 : index
    %9 = vector.load %arg6[%c0_6, %c0_7] : memref<1x128xf32, #tpu.memory_space<vmem>>, vector<1x128xf32>
    %10 = vector.broadcast %9 : vector<1x128xf32> to vector<256x128xf32>
    %11 = arith.addf %8, %10 : vector<256x128xf32>
    %cst_8 = arith.constant 0.000000e+00 : f32
    %12 = vector.broadcast %cst_8 : f32 to vector<256x128xf32>
    %13 = arith.maximumf %11, %12 : vector<256x128xf32>
    %cst_9 = arith.constant 0.000000e+00 : f32
    %14 = vector.broadcast %cst_9 : f32 to vector<1x128xf32>
    %15 = vector.extract_strided_slice %13 {offsets = [0, 0], sizes = [255, 128], strides = [1, 1]} : vector<256x128xf32> to vector<255x128xf32>
    %16 = tpu.concatenate %14, %15 in 0 : vector<1x128xf32>, vector<255x128xf32> -> vector<256x128xf32>
    %17 = vector.shape_cast %16 : vector<256x128xf32> to vector<16x16x128xf32>
    %18 = vector.extract_strided_slice %13 {offsets = [1, 0], sizes = [255, 128], strides = [1, 1]} : vector<256x128xf32> to vector<255x128xf32>
    %19 = tpu.concatenate %18, %14 in 0 : vector<255x128xf32>, vector<1x128xf32> -> vector<256x128xf32>
    %20 = vector.shape_cast %19 : vector<256x128xf32> to vector<16x16x128xf32>
    %21 = tpu.iota {dimensions = array<i32: 1>} : vector<16x16x128xi32>
    %cst_10 = arith.constant 0.000000e+00 : bf16
    %22 = vector.broadcast %cst_10 : bf16 to vector<16x384xbf16>
    %c0_11 = arith.constant 0 : index
    %c0_12 = arith.constant 0 : index
    %c0_13 = arith.constant 0 : index
    %23 = vector.load %arg12[%c0_11, %c0_12, %c0_13] : memref<18x16x384xbf16, #tpu.memory_space<vmem>>, vector<1x16x384xbf16>
    %24 = vector.shape_cast %23 : vector<1x16x384xbf16> to vector<16x384xbf16>
    %25 = vector.shape_cast %22 : vector<16x384xbf16> to vector<1x16x384xbf16>
    tpu.vector_store %arg12[%c0_11, %c0_12, %c0_13], %25 {strides = array<i32>} : memref<18x16x384xbf16, #tpu.memory_space<vmem>>, vector<1x16x384xbf16>,
    %cst_14 = arith.constant 0.000000e+00 : bf16
    %26 = vector.broadcast %cst_14 : bf16 to vector<16x384xbf16>
    %c17 = arith.constant 17 : index
    %c0_15 = arith.constant 0 : index
    %c0_16 = arith.constant 0 : index
    %27 = vector.load %arg12[%c17, %c0_15, %c0_16] : memref<18x16x384xbf16, #tpu.memory_space<vmem>>, vector<1x16x384xbf16>
    %28 = vector.shape_cast %27 : vector<1x16x384xbf16> to vector<16x384xbf16>
    %29 = vector.shape_cast %26 : vector<16x384xbf16> to vector<1x16x384xbf16>
    tpu.vector_store %arg12[%c17, %c0_15, %c0_16], %29 {strides = array<i32>} : memref<18x16x384xbf16, #tpu.memory_space<vmem>>, vector<1x16x384xbf16>,
    %c0_i32 = arith.constant 0 : i32
    %30 = vector.broadcast %c0_i32 : i32 to vector<16x16x128xi32>
    %31 = arith.cmpi sgt, %21, %30 : vector<16x16x128xi32>
    %cst_17 = arith.constant 0.000000e+00 : f32
    %32 = vector.broadcast %cst_17 : f32 to vector<16x16x128xf32>
    %33 = arith.select %31, %17, %32 : vector<16x16x128xi1>, vector<16x16x128xf32>
    %34 = arith.truncf %33 : vector<16x16x128xf32> to vector<16x16x128xbf16>
    %c1 = arith.constant 1 : index
    %c0_18 = arith.constant 0 : index
    %c0_19 = arith.constant 0 : index
    %35 = vector.load %arg12[%c1, %c0_18, %c0_19] : memref<18x16x384xbf16, #tpu.memory_space<vmem>>, vector<16x16x128xbf16>
    tpu.vector_store %arg12[%c1, %c0_18, %c0_19], %34 {strides = array<i32>} : memref<18x16x384xbf16, #tpu.memory_space<vmem>>, vector<16x16x128xbf16>,
    %36 = vector.shape_cast %13 : vector<256x128xf32> to vector<16x16x128xf32>
    %37 = arith.truncf %36 : vector<16x16x128xf32> to vector<16x16x128xbf16>
    %c1_20 = arith.constant 1 : index
    %c0_21 = arith.constant 0 : index
    %c128 = arith.constant 128 : index
    %38 = vector.load %arg12[%c1_20, %c0_21, %c128] : memref<18x16x384xbf16, #tpu.memory_space<vmem>>, vector<16x16x128xbf16>
    tpu.vector_store %arg12[%c1_20, %c0_21, %c128], %37 {strides = array<i32>} : memref<18x16x384xbf16, #tpu.memory_space<vmem>>, vector<16x16x128xbf16>,
    %c15_i32 = arith.constant 15 : i32
    %39 = vector.broadcast %c15_i32 : i32 to vector<16x16x128xi32>
    %40 = arith.cmpi slt, %21, %39 : vector<16x16x128xi32>
    %cst_22 = arith.constant 0.000000e+00 : f32
    %41 = vector.broadcast %cst_22 : f32 to vector<16x16x128xf32>
    %42 = arith.select %40, %20, %41 : vector<16x16x128xi1>, vector<16x16x128xf32>
    %43 = arith.truncf %42 : vector<16x16x128xf32> to vector<16x16x128xbf16>
    %c1_23 = arith.constant 1 : index
    %c0_24 = arith.constant 0 : index
    %c256 = arith.constant 256 : index
    %44 = vector.load %arg12[%c1_23, %c0_24, %c256] : memref<18x16x384xbf16, #tpu.memory_space<vmem>>, vector<16x16x128xbf16>
    tpu.vector_store %arg12[%c1_23, %c0_24, %c256], %43 {strides = array<i32>} : memref<18x16x384xbf16, #tpu.memory_space<vmem>>, vector<16x16x128xbf16>,
    %c0_25 = arith.constant 0 : index
    %c0_26 = arith.constant 0 : index
    %c0_27 = arith.constant 0 : index
    %45 = vector.load %arg12[%c0_25, %c0_26, %c0_27] : memref<18x16x384xbf16, #tpu.memory_space<vmem>>, vector<16x16x384xbf16>
    %46 = vector.shape_cast %45 : vector<16x16x384xbf16> to vector<256x384xbf16>
    %c0_28 = arith.constant 0 : index
    %c0_29 = arith.constant 0 : index
    %c0_30 = arith.constant 0 : index
    %47 = vector.load %arg3[%c0_28, %c0_29, %c0_30] : memref<3x384x128xbf16, #tpu.memory_space<vmem>>, vector<1x384x128xbf16>
    %48 = vector.shape_cast %47 : vector<1x384x128xbf16> to vector<384x128xbf16>
    %cst_31 = arith.constant dense<0.000000e+00> : vector<256x128xf32>
    %49 = tpu.matmul %46, %48, %cst_31 {dimension_numbers = #tpu.dot_dimension_numbers<[1], [0], [0], [1], [0, 0, 1, 1], [], []>} : vector<256x384xbf16>, vector<384x128xbf16>, vector<256x128xf32> -> vector<256x128xf32>
    %c1_32 = arith.constant 1 : index
    %c0_33 = arith.constant 0 : index
    %c0_34 = arith.constant 0 : index
    %50 = vector.load %arg12[%c1_32, %c0_33, %c0_34] : memref<18x16x384xbf16, #tpu.memory_space<vmem>>, vector<16x16x384xbf16>
    %51 = vector.shape_cast %50 : vector<16x16x384xbf16> to vector<256x384xbf16>
    %c1_35 = arith.constant 1 : index
    %c0_36 = arith.constant 0 : index
    %c0_37 = arith.constant 0 : index
    %52 = vector.load %arg3[%c1_35, %c0_36, %c0_37] : memref<3x384x128xbf16, #tpu.memory_space<vmem>>, vector<1x384x128xbf16>
    %53 = vector.shape_cast %52 : vector<1x384x128xbf16> to vector<384x128xbf16>
    %cst_38 = arith.constant dense<0.000000e+00> : vector<256x128xf32>
    %54 = tpu.matmul %51, %53, %cst_38 {dimension_numbers = #tpu.dot_dimension_numbers<[1], [0], [0], [1], [0, 0, 1, 1], [], []>} : vector<256x384xbf16>, vector<384x128xbf16>, vector<256x128xf32> -> vector<256x128xf32>
    %55 = arith.addf %49, %54 : vector<256x128xf32>
    %c2 = arith.constant 2 : index
    %c0_39 = arith.constant 0 : index
    %c0_40 = arith.constant 0 : index
    %56 = vector.load %arg12[%c2, %c0_39, %c0_40] : memref<18x16x384xbf16, #tpu.memory_space<vmem>>, vector<16x16x384xbf16>
    %57 = vector.shape_cast %56 : vector<16x16x384xbf16> to vector<256x384xbf16>
    %c2_41 = arith.constant 2 : index
    %c0_42 = arith.constant 0 : index
    %c0_43 = arith.constant 0 : index
    %58 = vector.load %arg3[%c2_41, %c0_42, %c0_43] : memref<3x384x128xbf16, #tpu.memory_space<vmem>>, vector<1x384x128xbf16>
    %59 = vector.shape_cast %58 : vector<1x384x128xbf16> to vector<384x128xbf16>
    %cst_44 = arith.constant dense<0.000000e+00> : vector<256x128xf32>
    %60 = tpu.matmul %57, %59, %cst_44 {dimension_numbers = #tpu.dot_dimension_numbers<[1], [0], [0], [1], [0, 0, 1, 1], [], []>} : vector<256x384xbf16>, vector<384x128xbf16>, vector<256x128xf32> -> vector<256x128xf32>
    %61 = arith.addf %55, %60 : vector<256x128xf32>
    %c0_45 = arith.constant 0 : index
    %c0_46 = arith.constant 0 : index
    %62 = vector.load %arg7[%c0_45, %c0_46] : memref<1x128xf32, #tpu.memory_space<vmem>>, vector<1x128xf32>
    %63 = vector.broadcast %62 : vector<1x128xf32> to vector<256x128xf32>
    %64 = arith.mulf %61, %63 : vector<256x128xf32>
    %c0_47 = arith.constant 0 : index
    %c0_48 = arith.constant 0 : index
    %65 = vector.load %arg8[%c0_47, %c0_48] : memref<1x128xf32, #tpu.memory_space<vmem>>, vector<1x128xf32>
    %66 = vector.broadcast %65 : vector<1x128xf32> to vector<256x128xf32>
    %67 = arith.addf %64, %66 : vector<256x128xf32>
    %cst_49 = arith.constant 0.000000e+00 : f32
    %68 = vector.broadcast %cst_49 : f32 to vector<256x128xf32>
    %69 = arith.maximumf %67, %68 : vector<256x128xf32>
    %70 = arith.truncf %69 : vector<256x128xf32> to vector<256x128xbf16>
    %c0_50 = arith.constant 0 : index
    %c0_51 = arith.constant 0 : index
    %71 = vector.load %arg4[%c0_50, %c0_51] : memref<128x128xbf16, #tpu.memory_space<vmem>>, vector<128x128xbf16>
    %cst_52 = arith.constant dense<0.000000e+00> : vector<256x128xf32>
    %72 = tpu.matmul %70, %71, %cst_52 {dimension_numbers = #tpu.dot_dimension_numbers<[1], [0], [0], [1], [0, 0, 1, 1], [], []>} : vector<256x128xbf16>, vector<128x128xbf16>, vector<256x128xf32> -> vector<256x128xf32>
    %c0_53 = arith.constant 0 : index
    %c0_54 = arith.constant 0 : index
    %73 = vector.load %arg9[%c0_53, %c0_54] : memref<1x128xf32, #tpu.memory_space<vmem>>, vector<1x128xf32>
    %74 = vector.broadcast %73 : vector<1x128xf32> to vector<256x128xf32>
    %75 = arith.mulf %72, %74 : vector<256x128xf32>
    %c0_55 = arith.constant 0 : index
    %c0_56 = arith.constant 0 : index
    %76 = vector.load %arg10[%c0_55, %c0_56] : memref<1x128xf32, #tpu.memory_space<vmem>>, vector<1x128xf32>
    %77 = vector.broadcast %76 : vector<1x128xf32> to vector<256x128xf32>
    %78 = arith.addf %75, %77 : vector<256x128xf32>
    %79 = arith.addf %78, %2 : vector<256x128xf32>
    %cst_57 = arith.constant 0.000000e+00 : f32
    %80 = vector.broadcast %cst_57 : f32 to vector<256x128xf32>
    %81 = arith.maximumf %79, %80 : vector<256x128xf32>
    %82 = tpu.transpose %81, [1, 0] : vector<256x128xf32> -> vector<128x256xf32>
    %83 = vector.shape_cast %82 : vector<128x256xf32> to vector<1x128x256xf32>
    %c0_58 = arith.constant 0 : index
    %c0_59 = arith.constant 0 : index
    %c0_60 = arith.constant 0 : index
    %84 = vector.load %arg11[%c0_58, %c0_59, %c0_60] : memref<1x128x256xf32, #tpu.memory_space<vmem>>, vector<1x128x256xf32>
    tpu.vector_store %arg11[%c0_58, %c0_59, %c0_60], %83 {strides = array<i32>} : memref<1x128x256xf32, #tpu.memory_space<vmem>>, vector<1x128x256xf32>,
    return
  }
  func.func @transform_0(%arg0: i32) -> (i32, i32, i32) {
    %c0_i32 = arith.constant 0 : i32
    %c0_i32_0 = arith.constant 0 : i32
    %c0_i32_1 = arith.constant 0 : i32
    return %arg0, %c0_i32, %c0_i32_0 : i32, i32, i32
  }
  func.func @transform_1(%arg0: i32) -> (i32, i32) {
    %c0_i32 = arith.constant 0 : i32
    %c0_i32_0 = arith.constant 0 : i32
    %c0_i32_1 = arith.constant 0 : i32
    return %c0_i32, %c0_i32_0 : i32, i32
  }
  func.func @transform_2(%arg0: i32) -> (i32, i32, i32) {
    %c0_i32 = arith.constant 0 : i32
    %c0_i32_0 = arith.constant 0 : i32
    %c0_i32_1 = arith.constant 0 : i32
    %c0_i32_2 = arith.constant 0 : i32
    return %c0_i32, %c0_i32_0, %c0_i32_1 : i32, i32, i32
  }
  func.func @transform_3(%arg0: i32) -> (i32, i32) {
    %c0_i32 = arith.constant 0 : i32
    %c0_i32_0 = arith.constant 0 : i32
    %c0_i32_1 = arith.constant 0 : i32
    return %c0_i32, %c0_i32_0 : i32, i32
  }
  func.func @transform_4(%arg0: i32) -> (i32, i32) {
    %c0_i32 = arith.constant 0 : i32
    %c0_i32_0 = arith.constant 0 : i32
    %c0_i32_1 = arith.constant 0 : i32
    return %c0_i32, %c0_i32_0 : i32, i32
  }
  func.func @transform_5(%arg0: i32) -> (i32, i32) {
    %c0_i32 = arith.constant 0 : i32
    %c0_i32_0 = arith.constant 0 : i32
    %c0_i32_1 = arith.constant 0 : i32
    return %c0_i32, %c0_i32_0 : i32, i32
  }
  func.func @transform_6(%arg0: i32) -> (i32, i32) {
    %c0_i32 = arith.constant 0 : i32
    %c0_i32_0 = arith.constant 0 : i32
    %c0_i32_1 = arith.constant 0 : i32
    return %c0_i32, %c0_i32_0 : i32, i32
  }
  func.func @transform_7(%arg0: i32) -> (i32, i32) {
    %c0_i32 = arith.constant 0 : i32
    %c0_i32_0 = arith.constant 0 : i32
    %c0_i32_1 = arith.constant 0 : i32
    return %c0_i32, %c0_i32_0 : i32, i32
  }
  func.func @transform_8(%arg0: i32) -> (i32, i32) {
    %c0_i32 = arith.constant 0 : i32
    %c0_i32_0 = arith.constant 0 : i32
    %c0_i32_1 = arith.constant 0 : i32
    return %c0_i32, %c0_i32_0 : i32, i32
  }
  func.func @transform_9(%arg0: i32) -> (i32, i32) {
    %c0_i32 = arith.constant 0 : i32
    %c0_i32_0 = arith.constant 0 : i32
    %c0_i32_1 = arith.constant 0 : i32
    return %c0_i32, %c0_i32_0 : i32, i32
  }
  func.func @transform_10(%arg0: i32) -> (i32, i32, i32) {
    %c0_i32 = arith.constant 0 : i32
    %c0_i32_0 = arith.constant 0 : i32
    %c0_i32_1 = arith.constant 0 : i32
    return %arg0, %c0_i32, %c0_i32_0 : i32, i32, i32
  }
}

</mosaic_0001>

<bundles_post_ra>
// kernel: bottleneck_caffe_forward.1
= control target key start
LH: loop header
LB: loop body
LE: loop exit
PB: predicated region body
PF: predicated region fallthrough
CT: control target
= control target key end

     0   :  { %s5088_s13 = smov 0   ;;  %s6794_s0 = inlined_call_operand.vmem [shape: f32[2,128,256], index: 0, kind: input, shape index: {}]   ;;  %s6795_s1 = inlined_call_operand.vmem [shape: bf16[128,128], index: 1, kind: input, shape index: {}]   ;;  %s6796_s2 = inlined_call_operand.vmem [shape: bf16[3,384,128], index: 2, kind: input, shape index: {}]   ;;  %s6797_s3 = inlined_call_operand.vmem [shape: bf16[128,128], index: 3, kind: input, shape index: {}]   ;;  %s6798_s4 = inlined_call_operand.vmem [shape: f32[1,128], index: 4, kind: input, shape index: {}]   ;;  %s6799_s5 = inlined_call_operand.vmem [shape: f32[1,128], index: 5, kind: input, shape index: {}]   ;;  %s6800_s6 = inlined_call_operand.vmem [shape: f32[1,128], index: 6, kind: input, shape index: {}]   ;;  %s6801_s7 = inlined_call_operand.vmem [shape: f32[1,128], index: 7, kind: input, shape index: {}]   ;;  %s6802_s8 = inlined_call_operand.vmem [shape: f32[1,128], index: 8, kind: input, shape index: {}]   ;;  %s6803_s9 = inlined_call_operand.vmem [shape: f32[1,128], index: 9, kind: input, shape index: {}]   ;;  %s6804_s10 = inlined_call_operand.vmem [shape: f32[2,128,256], index: 10, kind: output, shape index: {}]  }
   0x1 LB: > { %s3574_s14 = sadd.s32 4294967295, %s5029_s13   ;;  %p3578_p0 = scmp.ge.s32.totalorder %s5029_s13, 1  ;;  %s5029_s13 = sphi %s5088_s13, %s20_s13  }
   0x2   : > { %p312_p1 = scmp.lt.s32.totalorder %s5029_s13, 3 }
   0x4   : > { %p313_p2 = pnand %p3578_p0, %p312_p1 }
   0x6   : > { %316 = sbr.rel (%p313_p2) target bundleno = 1348 (0x544), region = 60 }
   0xd   : > { %p350_p3 = scmp.lt.s32.totalorder %s3574_s14, 1  ;;  %v4935_v0 = vld [vmem:[%s6795_s1] sm:$0xff]   ;;  %v4936_v1 = vld [vmem:[%s6795_s1 + $0x8] sm:$0xff]   ;;  %v4937_v2 = vld [vmem:[%s6795_s1 + $0x10] sm:$0xff]   ;;  %vm840_vm0 = vcmask 1040384   ;;  %vm937_vm1 = vcmask 1046528  }
   0xe   : > { %4509 = vmatprep.subr.bf16.mxu0 %v4935_v0  ;;  %4749 = vmatprep.subr.bf16.mxu1 %v4935_v0  ;;  %v4938_v6 = vld [vmem:[%s6795_s1 + $0x18] sm:$0xff]   ;;  %v4939_v9 = vld [vmem:[%s6795_s1 + $0x20] sm:$0xff]   ;;  %v4940_v12 = vld [vmem:[%s6795_s1 + $0x28] sm:$0xff]   ;;  %vm5031_vm4 = vmmov 1  }
   0xf   : > { %s6987_s14 = smov (!%p350_p3, %s3574_s14), 1  ;;  %4510 = vmatpush3.bf16.msra.mxu0 %v4935_v0  ;;  %4757 = vmatpush3.bf16.msra.mxu1 %v4935_v0  ;;  %v4941_v15 = vld [vmem:[%s6795_s1 + $0x30] sm:$0xff]   ;;  %v4942_v18 = vld [vmem:[%s6795_s1 + $0x38] sm:$0xff]   ;;  %v4943_v40 = vld [vmem:[%s6796_s2 + $0x100] sm:$0xff]  }
  0x10   : > { %s3775_s19 = sshll.u32 %s6987_s14, 8  ;;  %4511 = vmatprep.subr.bf16.mxu0 %v4936_v1  ;;  %4750 = vmatprep.subr.bf16.mxu1 %v4936_v1  ;;  %v4951_v41 = vld [vmem:[%s6796_s2 + $0x140] sm:$0xff]   ;;  %v4945_v55 = vld [vmem:[%s6796_s2 + $0x108] sm:$0xff]   ;;  %v4947_v59 = vld [vmem:[%s6796_s2 + $0x110] sm:$0xff]  }
  0x11   : > { %s5113_s24 = scalar_lea.vmem %s6794_s0, %s3775_s19  ;;  %v4944_v53 = vld [vmem:[%s6796_s2 + $0xc0] sm:$0xff]   ;;  %v4946_v58 = vld [vmem:[%s6796_s2 + $0xc8] sm:$0xff]   ;;  %v4948_v63 = vld [vmem:[%s6796_s2 + $0xd0] sm:$0xff]   ;;  %s6757_s22 = scalar_lea.vmem %s6804_s10, %s3775_s19 }
  0x12   : > { %v361_v3 = vld [vmem:[%s5113_s24] sm:$0xff]  ;;  %v362_v4 = vld [vmem:[%s5113_s24 + $0x8] sm:$0xff]  ;;  %v363_v5 = vld [vmem:[%s5113_s24 + $0x10] sm:$0xff] }
  0x13   : > { %393 = vxpose.xlu0.b32.start [1/16] %v361_v3, 128  ;;  %4512 = vmatpush3.bf16.msra.mxu0 %v4936_v1  ;;  %v364_v7 = vld [vmem:[%s5113_s24 + $0x18] sm:$0xff]  ;;  %v365_v8 = vld [vmem:[%s5113_s24 + $0x20] sm:$0xff]  ;;  %v366_v10 = vld [vmem:[%s5113_s24 + $0x28] sm:$0xff] }
  0x14   : > { %425 = vxpose.xlu1.b32.start [1/16] %v362_v4, 128  ;;  %4513 = vmatprep.subr.bf16.mxu0 %v4937_v2  ;;  %v367_v11 = vld [vmem:[%s5113_s24 + $0x30] sm:$0xff]  ;;  %v368_v13 = vld [vmem:[%s5113_s24 + $0x38] sm:$0xff]  ;;  %v369_v14 = vld [vmem:[%s5113_s24 + $0x40] sm:$0xff] }
  0x15   : > { %4758 = vmatpush3.bf16.msra.mxu1 %v4936_v1  ;;  %v370_v16 = vld [vmem:[%s5113_s24 + $0x48] sm:$0xff]  ;;  %v371_v17 = vld [vmem:[%s5113_s24 + $0x50] sm:$0xff]  ;;  %v372_v19 = vld [vmem:[%s5113_s24 + $0x58] sm:$0xff] }
  0x16   : > { %4751 = vmatprep.subr.bf16.mxu1 %v4937_v2  ;;  %v373_v20 = vld [vmem:[%s5113_s24 + $0x60] sm:$0xff]  ;;  %v374_v21 = vld [vmem:[%s5113_s24 + $0x68] sm:$0xff]  ;;  %v375_v22 = vld [vmem:[%s5113_s24 + $0x70] sm:$0xff] }
  0x17   : > { %394 = vxpose.xlu0.b32.cont [2/16] %v363_v5, 128  ;;  %4514 = vmatpush3.bf16.msra.mxu0 %v4937_v2  ;;  %v376_v23 = vld [vmem:[%s5113_s24 + $0x78] sm:$0xff]  ;;  %v377_v24 = vld [vmem:[%s5113_s24 + $0x80] sm:$0xff]  ;;  %v378_v25 = vld [vmem:[%s5113_s24 + $0x88] sm:$0xff] }
  0x18   : > { %426 = vxpose.xlu1.b32.cont [2/16] %v364_v7, 128  ;;  %4515 = vmatprep.subr.bf16.mxu0 %v4938_v6  ;;  %v379_v26 = vld [vmem:[%s5113_s24 + $0x90] sm:$0xff]  ;;  %v380_v27 = vld [vmem:[%s5113_s24 + $0x98] sm:$0xff]  ;;  %v381_v28 = vld [vmem:[%s5113_s24 + $0xa0] sm:$0xff] }
  0x19   : > { %4759 = vmatpush3.bf16.msra.mxu1 %v4937_v2  ;;  %v382_v29 = vld [vmem:[%s5113_s24 + $0xa8] sm:$0xff]  ;;  %v383_v30 = vld [vmem:[%s5113_s24 + $0xb0] sm:$0xff]  ;;  %v384_v31 = vld [vmem:[%s5113_s24 + $0xb8] sm:$0xff] }
  0x1a   : > { %4752 = vmatprep.subr.bf16.mxu1 %v4938_v6  ;;  %v385_v32 = vld [vmem:[%s5113_s24 + $0xc0] sm:$0xff]  ;;  %v386_v33 = vld [vmem:[%s5113_s24 + $0xc8] sm:$0xff]  ;;  %v387_v34 = vld [vmem:[%s5113_s24 + $0xd0] sm:$0xff] }
  0x1b   : > { %395 = vxpose.xlu0.b32.cont [3/16] %v365_v8, 128  ;;  %4516 = vmatpush3.bf16.msra.mxu0 %v4938_v6  ;;  %v388_v35 = vld [vmem:[%s5113_s24 + $0xd8] sm:$0xff]  ;;  %v389_v36 = vld [vmem:[%s5113_s24 + $0xe0] sm:$0xff]  ;;  %v390_v37 = vld [vmem:[%s5113_s24 + $0xe8] sm:$0xff] }
  0x1c   : > { %427 = vxpose.xlu1.b32.cont [3/16] %v366_v10, 128  ;;  %4517 = vmatprep.subr.bf16.mxu0 %v4939_v9  ;;  %v391_v38 = vld [vmem:[%s5113_s24 + $0xf0] sm:$0xff]  ;;  %v392_v39 = vld [vmem:[%s5113_s24 + $0xf8] sm:$0xff]  ;;  %v4952_v5 = vld [vmem:[%s6796_s2 + $0x120] sm:$0xff]  }
  0x1d   : > { %4760 = vmatpush3.bf16.msra.mxu1 %v4938_v6  ;;  %v4949_v1 = vld [vmem:[%s6796_s2 + $0x118] sm:$0xff]  }
  0x1e   : > { %4753 = vmatprep.subr.bf16.mxu1 %v4939_v9  ;;  %v4950_v4 = vld [vmem:[%s6796_s2 + $0xd8] sm:$0xff]  }
  0x1f   : > { %396 = vxpose.xlu0.b32.cont [4/16] %v367_v11, 128  ;;  %4518 = vmatpush3.bf16.msra.mxu0 %v4939_v9 }
  0x20   : > { %428 = vxpose.xlu1.b32.cont [4/16] %v368_v13, 128  ;;  %4519 = vmatprep.subr.bf16.mxu0 %v4940_v12 }
  0x21   : > { %4761 = vmatpush3.bf16.msra.mxu1 %v4939_v9 }
  0x22   : > { %4754 = vmatprep.subr.bf16.mxu1 %v4940_v12 }
  0x23   : > { %397 = vxpose.xlu0.b32.cont [5/16] %v369_v14, 128  ;;  %4520 = vmatpush3.bf16.msra.mxu0 %v4940_v12 }
  0x24   : > { %429 = vxpose.xlu1.b32.cont [5/16] %v370_v16, 128  ;;  %4521 = vmatprep.subr.bf16.mxu0 %v4941_v15 }
  0x25   : > { %4762 = vmatpush3.bf16.msra.mxu1 %v4940_v12 }
  0x26   : > { %4755 = vmatprep.subr.bf16.mxu1 %v4941_v15 }
  0x27   : > { %398 = vxpose.xlu0.b32.cont [6/16] %v371_v17, 128  ;;  %4522 = vmatpush3.bf16.msra.mxu0 %v4941_v15 }
  0x28   : > { %430 = vxpose.xlu1.b32.cont [6/16] %v372_v19, 128  ;;  %4523 = vmatprep.subr.bf16.mxu0 %v4942_v18 }
  0x29   : > { %4763 = vmatpush3.bf16.msra.mxu1 %v4941_v15 }
  0x2a   : > { %4756 = vmatprep.subr.bf16.mxu1 %v4942_v18 }
  0x2b   : > { %399 = vxpose.xlu0.b32.cont [7/16] %v373_v20, 128  ;;  %4524 = vmatpush3.bf16.msra.mxu0 %v4942_v18 }
  0x2c   : > { %431 = vxpose.xlu1.b32.cont [7/16] %v374_v21, 128  ;;  %4557 = vmatprep.subr.bf16.mxu0 %v4951_v41 }
  0x2d   : > { %4764 = vmatpush3.bf16.msra.mxu1 %v4942_v18 }
  0x2e   : > { %4077 = vmatprep.subr.bf16.mxu1 %v4943_v40  ;;  %v4959_v40 = vld [vmem:[%s6796_s2 + $0xf0] sm:$0xff]  }
  0x2f   : > { %400 = vxpose.xlu0.b32.cont [8/16] %v375_v22, 128 }
  0x30   : > { %432 = vxpose.xlu1.b32.cont [8/16] %v376_v23, 128 }
  0x33   : > { %401 = vxpose.xlu0.b32.cont [9/16] %v377_v24, 128 }
  0x34   : > { %433 = vxpose.xlu1.b32.cont [9/16] %v378_v25, 128 }
  0x37   : > { %402 = vxpose.xlu0.b32.cont [10/16] %v379_v26, 128 }
  0x38   : > { %434 = vxpose.xlu1.b32.cont [10/16] %v380_v27, 128 }
  0x3b   : > { %403 = vxpose.xlu0.b32.cont [11/16] %v381_v28, 128 }
  0x3c   : > { %435 = vxpose.xlu1.b32.cont [11/16] %v382_v29, 128 }
  0x3f   : > { %404 = vxpose.xlu0.b32.cont [12/16] %v383_v30, 128 }
  0x40   : > { %436 = vxpose.xlu1.b32.cont [12/16] %v384_v31, 128 }
  0x43   : > { %405 = vxpose.xlu0.b32.cont [13/16] %v385_v32, 128 }
  0x44   : > { %437 = vxpose.xlu1.b32.cont [13/16] %v386_v33, 128 }
  0x47   : > { %406 = vxpose.xlu0.b32.cont [14/16] %v387_v34, 128  ;;  %v4953_v34 = vld [vmem:[%s6796_s2 + $0xe0] sm:$0xff]  }
  0x48   : > { %438 = vxpose.xlu1.b32.cont [14/16] %v388_v35, 128  ;;  %v4954_v35 = vld [vmem:[%s6796_s2 + $0x148] sm:$0xff]  }
  0x4b   : > { %407 = vxpose.xlu0.b32.cont [15/16] %v389_v36, 128  ;;  %v4955_v36 = vld [vmem:[%s6796_s2 + $0x128] sm:$0xff]  }
  0x4c   : > { %439 = vxpose.xlu1.b32.cont [15/16] %v390_v37, 128  ;;  %v4956_v37 = vld [vmem:[%s6796_s2 + $0xe8] sm:$0xff]  }
  0x4f   : > { %408 = vxpose.xlu0.b32.end [16/16] %v391_v38, 128  ;;  %v4957_v38 = vld [vmem:[%s6796_s2 + $0x150] sm:$0xff]  }
  0x50   : > { %440 = vxpose.xlu1.b32.end [16/16] %v392_v39, 128  ;;  %v4958_v39 = vld [vmem:[%s6796_s2 + $0x130] sm:$0xff]  }
  0x93   : > { %v5168_v42 = vpop.trf.xlu0 }
  0x94   : > { %6856 = vst [vmem:[#allocation3_spill] sm:$0xff] %v5168_v42  ;;  %v5170_v43 = vpop.trf.xlu1 }
  0x95   : > { %6857 = vst [vmem:[#allocation4_spill] sm:$0xff] %v5170_v43 }
  0x97   : > { %v5172_v44 = vpop.trf.xlu0 }
  0x98   : > { %6858 = vst [vmem:[#allocation5_spill] sm:$0xff] %v5172_v44  ;;  %v457_v45 = vpack.c.bf16 %v5172_v44, %v5168_v42  ;;  %v5176_v46 = vpop.trf.xlu1 }
  0x99   : > { %6859 = vst [vmem:[#allocation6_spill] sm:$0xff] %v5176_v46  ;;  %v465_v47 = vpack.c.bf16 %v5176_v46, %v5170_v43  ;;  %v4999_v43 = vld [vmem:[%s6796_s2 + $0x1f8] sm:$0xff]  }
  0x9a   : > { %4525 = vmatprep.mubr.bf16.mxu0 %v457_v45  ;;  %v4961_v45 = vld [vmem:[%s6796_s2 + $0x138] sm:$0xff]  }
  0x9b   : > { %v5180_v48 = vpop.trf.xlu0  ;;  %4541 = vmatprep.mubr.bf16.mxu1 %v465_v47  ;;  %v4962_v47 = vld [vmem:[%s6796_s2 + $0xf8] sm:$0xff]  }
  0x9c   : > { %6860 = vst [vmem:[#allocation7_spill] sm:$0xff] %v5180_v48  ;;  %v5182_v49 = vpop.trf.xlu1 }
  0x9d   : > { %6861 = vst [vmem:[#allocation8_spill] sm:$0xff] %v5182_v49 }
  0x9f   : > { %v5184_v50 = vpop.trf.xlu0 }
  0xa0   : > { %6862 = vst [vmem:[#allocation9_spill] sm:$0xff] %v5184_v50  ;;  %v458_v51 = vpack.c.bf16 %v5184_v50, %v5180_v48  ;;  %v5188_v52 = vpop.trf.xlu1 }
  0xa1   : > { %6863 = vst [vmem:[#allocation10_spill] sm:$0xff] %v5188_v52  ;;  %v466_v54 = vpack.c.bf16 %v5188_v52, %v5182_v49 }
  0xa2   : > { %4526 = vmatmul.mubr.bf16.vlgmr.msra.gmra.mrb[0].mxu0 %v458_v51  ;;  %v4963_v51 = vld [vmem:[%s6796_s2 + $0x160] sm:$0xff]  }
  0xa3   : > { %v5198_v56 = vpop.trf.xlu0  ;;  %4542 = vmatmul.mubr.bf16.vlgmr.msra.gmra.mrb[0].mxu1 %v466_v54  ;;  %4558 = vmatpush3.bf16.msra.mxu0 %v4951_v41  ;;  %v4960_v41 = vld [vmem:[%s6796_s2 + $0x158] sm:$0xff]   ;;  %v4965_v54 = vld [vmem:[%s6796_s2 + $0x170] sm:$0xff]  }
  0xa4   : > { %6864 = vst [vmem:[#allocation11_spill] sm:$0xff] %v5198_v56  ;;  %v5200_v57 = vpop.trf.xlu1  ;;  %4078 = vmatpush3.bf16.msra.mxu1 %v4944_v53  ;;  %4559 = vmatprep.subr.bf16.mxu0 %v4954_v35  ;;  %v4964_v53 = vld [vmem:[%s6796_s2 + $0x168] sm:$0xff]  }
  0xa5   : > { %6865 = vst [vmem:[#allocation12_spill] sm:$0xff] %v5200_v57  ;;  %4079 = vmatprep.subr.bf16.mxu1 %v4945_v55  ;;  %v4966_v55 = vld [vmem:[%s6796_s2 + $0x178] sm:$0xff]  }
  0xa7   : > { %v5208_v60 = vpop.trf.xlu0  ;;  %4560 = vmatpush3.bf16.msra.mxu0 %v4954_v35 }
  0xa8   : > { %6866 = vst [vmem:[#allocation13_spill] sm:$0xff] %v5208_v60  ;;  %v459_v61 = vpack.c.bf16 %v5208_v60, %v5198_v56  ;;  %v5212_v62 = vpop.trf.xlu1  ;;  %4080 = vmatpush3.bf16.msra.mxu1 %v4946_v58  ;;  %4561 = vmatprep.subr.bf16.mxu0 %v4957_v38  ;;  %v4967_v58 = vld [vmem:[%s6796_s2 + $0x40] sm:$0xff]  }
  0xa9   : > { %6867 = vst [vmem:[#allocation14_spill] sm:$0xff] %v5212_v62  ;;  %v467_v0 = vpack.c.bf16 %v5212_v62, %v5200_v57  ;;  %4081 = vmatprep.subr.bf16.mxu1 %v4947_v59  ;;  %v4984_v59 = vld [vmem:[%s6796_s2 + $0x1c0] sm:$0xff]  }
  0xaa   : > { %4529 = vmatprep.mubr.bf16.mxu0 %v459_v61  ;;  %v1034_v61 = vlaneseq }
  0xab   : > { %v5222_v2 = vpop.trf.xlu0  ;;  %4545 = vmatprep.mubr.bf16.mxu1 %v467_v0  ;;  %4562 = vmatpush3.bf16.msra.mxu0 %v4957_v38 }
  0xac   : > { %6868 = vst [vmem:[#allocation15_spill] sm:$0xff] %v5222_v2  ;;  %v5224_v3 = vpop.trf.xlu1  ;;  %4082 = vmatpush3.bf16.msra.mxu1 %v4948_v63  ;;  %4563 = vmatprep.subr.bf16.mxu0 %v4960_v41  ;;  %v5339_v63 = vld [vmem:[%s6798_s4] ss:$0 sm:$0xff]  ;;  %v1035_v0 = vshrl.u32 %v1034_v61, 7 }
  0xad   : > { %6869 = vst [vmem:[#allocation16_spill] sm:$0xff] %v5224_v3  ;;  %4083 = vmatprep.subr.bf16.mxu1 %v4949_v1 }
  0xae   : > { %vm1044_vm2 = vcmp.gt.s32.totalorder %v1035_v0, 0 }
  0xaf   : > { %v5232_v6 = vpop.trf.xlu0  ;;  %4564 = vmatpush3.bf16.msra.mxu0 %v4960_v41  ;;  %vm5380_vm5 = vmpackc.low %vm5031_vm4, %vm1044_vm2 }
  0xb0   : > { %6870 = vst [vmem:[#allocation17_spill] sm:$0xff] %v5232_v6  ;;  %v460_v7 = vpack.c.bf16 %v5232_v6, %v5222_v2  ;;  %v5236_v8 = vpop.trf.xlu1  ;;  %4084 = vmatpush3.bf16.msra.mxu1 %v4950_v4  ;;  %4565 = vmatprep.subr.bf16.mxu0 %v4963_v51  ;;  %v5344_v4 = vld [vmem:[%s6799_s5] ss:$0 sm:$0xff] }
  0xb1   : > { %6871 = vst [vmem:[#allocation18_spill] sm:$0xff] %v5236_v8  ;;  %v468_v9 = vpack.c.bf16 %v5236_v8, %v5224_v3  ;;  %4085 = vmatprep.subr.bf16.mxu1 %v4952_v5 }
  0xb2   : > { %4530 = vmatmul.mubr.bf16.gmra.mrb[4].mxu0 %v460_v7 }
  0xb3   : > { %v5240_v10 = vpop.trf.xlu0  ;;  %4546 = vmatmul.mubr.bf16.gmra.mrb[4].mxu1 %v468_v9  ;;  %4566 = vmatpush3.bf16.msra.mxu0 %v4963_v51 }
  0xb4   : > { %6872 = vst [vmem:[#allocation19_spill] sm:$0xff] %v5240_v10  ;;  %v5242_v11 = vpop.trf.xlu1  ;;  %4086 = vmatpush3.bf16.msra.mxu1 %v4953_v34  ;;  %4567 = vmatprep.subr.bf16.mxu0 %v4964_v53 }
  0xb5   : > { %6873 = vst [vmem:[#allocation20_spill] sm:$0xff] %v5242_v11  ;;  %4087 = vmatprep.subr.bf16.mxu1 %v4955_v36 }
  0xb7   : > { %v5244_v12 = vpop.trf.xlu0  ;;  %4568 = vmatpush3.bf16.msra.mxu0 %v4964_v53 }
  0xb8   : > { %6874 = vst [vmem:[#allocation21_spill] sm:$0xff] %v5244_v12  ;;  %v461_v13 = vpack.c.bf16 %v5244_v12, %v5240_v10  ;;  %v5248_v14 = vpop.trf.xlu1  ;;  %4088 = vmatpush3.bf16.msra.mxu1 %v4956_v37  ;;  %4569 = vmatprep.subr.bf16.mxu0 %v4965_v54 }
  0xb9   : > { %6875 = vst [vmem:[#allocation22_spill] sm:$0xff] %v5248_v14  ;;  %v469_v15 = vpack.c.bf16 %v5248_v14, %v5242_v11  ;;  %4089 = vmatprep.subr.bf16.mxu1 %v4958_v39 }
  0xba   : > { %4533 = vmatprep.mubr.bf16.mxu0 %v461_v13 }
  0xbb   : > { %v5252_v16 = vpop.trf.xlu0  ;;  %4549 = vmatprep.mubr.bf16.mxu1 %v469_v15  ;;  %4570 = vmatpush3.bf16.msra.mxu0 %v4965_v54 }
  0xbc   : > { %6876 = vst [vmem:[#allocation23_spill] sm:$0xff] %v5252_v16  ;;  %v5254_v17 = vpop.trf.xlu1  ;;  %4090 = vmatpush3.bf16.msra.mxu1 %v4959_v40  ;;  %4571 = vmatprep.subr.bf16.mxu0 %v4966_v55 }
  0xbd   : > { %6877 = vst [vmem:[#allocation24_spill] sm:$0xff] %v5254_v17  ;;  %4091 = vmatprep.subr.bf16.mxu1 %v4961_v45 }
  0xbf   : > { %v5256_v18 = vpop.trf.xlu0  ;;  %4572 = vmatpush3.bf16.msra.mxu0 %v4966_v55 }
  0xc0   : > { %6878 = vst [vmem:[#allocation25_spill] sm:$0xff] %v5256_v18  ;;  %v462_v19 = vpack.c.bf16 %v5256_v18, %v5252_v16  ;;  %v5260_v20 = vpop.trf.xlu1  ;;  %4092 = vmatpush3.bf16.msra.mxu1 %v4962_v47  ;;  %4213 = vmatprep.subr.bf16.mxu0 %v4967_v58 }
  0xc1   : > { %6879 = vst [vmem:[#allocation26_spill] sm:$0xff] %v5260_v20  ;;  %v470_v21 = vpack.c.bf16 %v5260_v20, %v5254_v17  ;;  %4349 = vmatprep.subr.bf16.mxu1 %v4984_v59 }
  0xc2   : > { %4534 = vmatmul.mubr.bf16.gmra.mrb[8].mxu0 %v462_v19  ;;  %v1036_v19 = vadd.s32 8, %v1035_v0 }
  0xc3   : > { %v5264_v22 = vpop.trf.xlu0  ;;  %4550 = vmatmul.mubr.bf16.gmra.mrb[8].mxu1 %v470_v21 }
  0xc4   : > { %6880 = vst [vmem:[#allocation27_spill] sm:$0xff] %v5264_v22  ;;  %v5266_v23 = vpop.trf.xlu1  ;;  %vm1144_vm3 = vcmp.lt.s32.totalorder %v1036_v19, 15  ;;  %v4986_v19 = vld [vmem:[%s6796_s2 + $0x1c8] sm:$0xff]  }
  0xc5   : > { %6881 = vst [vmem:[#allocation28_spill] sm:$0xff] %v5266_v23  ;;  %vm5392_vm6 = vmpackc.low %vm1144_vm3, %vm5031_vm4 }
  0xc7   : > { %v5268_v24 = vpop.trf.xlu0 }
  0xc8   : > { %6882 = vst [vmem:[#allocation29_spill] sm:$0xff] %v5268_v24  ;;  %v463_v25 = vpack.c.bf16 %v5268_v24, %v5264_v22  ;;  %v5272_v26 = vpop.trf.xlu1 }
  0xc9   : > { %6883 = vst [vmem:[#allocation30_spill] sm:$0xff] %v5272_v26  ;;  %v471_v27 = vpack.c.bf16 %v5272_v26, %v5266_v23 }
  0xca   : > { %4537 = vmatprep.mubr.bf16.mxu0 %v463_v25 }
  0xcb   : > { %v5276_v28 = vpop.trf.xlu0  ;;  %4553 = vmatprep.mubr.bf16.mxu1 %v471_v27 }
  0xcc   : > { %6884 = vst [vmem:[#allocation31_spill] sm:$0xff] %v5276_v28  ;;  %v5278_v29 = vpop.trf.xlu1 }
  0xcd   : > { %6885 = vst [vmem:[#allocation32_spill] sm:$0xff] %v5278_v29 }
  0xcf   : > { %v5280_v30 = vpop.trf.xlu0 }
  0xd0   : > { %6886 = vst [vmem:[#allocation33_spill] sm:$0xff] %v5280_v30  ;;  %v464_v31 = vpack.c.bf16 %v5280_v30, %v5276_v28  ;;  %v5284_v32 = vpop.trf.xlu1 }
  0xd1   : > { %6887 = vst [vmem:[#allocation34_spill] sm:$0xff] %v5284_v32  ;;  %v472_v33 = vpack.c.bf16 %v5284_v32, %v5278_v29 }
  0xd2   : > { %4538 = vmatmul.mubr.bf16.gmra.mrb[12].mxu0 %v464_v31 }
  0xd3   : > { %4554 = vmatmul.mubr.bf16.gmra.mrb[12].mxu1 %v472_v33 }
 0x175   : > { %v4527_v1 = vpop.f32.mrb[0].mxu0 }
 0x176   : > { %v707_v5 = vmul.f32 %v4527_v1, %v5339_v63  ;;  %v571_v7 = vpop.f32.mrb[1].mxu0  ;;  %v4543_v9 = vpop.f32.mrb[0].mxu1 }
 0x177   : > { %v705_v13 = vmul.f32 %v5339_v63, %v571_v7  ;;  %v4528_v15 = vpop.f32.mrb[2].mxu0  ;;  %v723_v21 = vmul.f32 %v4543_v9, %v5339_v63  ;;  %v635_v25 = vpop.f32.mrb[1].mxu1 }
 0x178   : > { %v746_v27 = vadd.f32 %v5344_v4, %v707_v5  ;;  %v708_v31 = vmul.f32 %v4528_v15, %v5339_v63  ;;  %v574_v33 = vpop.f32.mrb[3].mxu0  ;;  %v721_v34 = vmul.f32 %v5339_v63, %v635_v25  ;;  %v4544_v35 = vpop.f32.mrb[2].mxu1 }
 0x179   : > { %v744_v36 = vadd.f32 %v5344_v4, %v705_v13  ;;  %v706_v37 = vmul.f32 %v5339_v63, %v574_v33  ;;  %v762_v38 = vadd.f32 %v5344_v4, %v723_v21  ;;  %v724_v39 = vmul.f32 %v4544_v35, %v5339_v63  ;;  %v638_v40 = vpop.f32.mrb[3].mxu1 }
 0x17a   : > { %v778_v41 = vmax.f32 %v746_v27, 0.0  ;;  %v747_v45 = vadd.f32 %v5344_v4, %v708_v31  ;;  %v760_v55 = vadd.f32 %v5344_v4, %v721_v34  ;;  %v722_v59 = vmul.f32 %v5339_v63, %v638_v40 }
 0x17b   : > { %v776_v47 = vmax.f32 %v744_v36, 0.0  ;;  %v745_v51 = vadd.f32 %v5344_v4, %v706_v37  ;;  %v5358_v53 = vmax.f32 %v762_v38, 0.0  ;;  %v763_v58 = vadd.f32 %v5344_v4, %v724_v39 }
 0x17c   : > { %v5360_v54 = vmax.f32 %v747_v45, 0.0  ;;  %v844_v61 = vrot.slane %v778_v41, 7  ;;  %v941_v1 = vrot.slane %v778_v41, 1  ;;  %v5022_v45 = vld [vmem:[%s6797_s3 + $0x38] sm:$0xff]  }
 0x17d   : > { %v841_v5 = vrot.slane %v776_v47, 7  ;;  %v777_v7 = vmax.f32 %v745_v51, 0.0  ;;  %v938_v9 = vrot.slane %v776_v47, 1  ;;  %v6806_v21 = vrot.slane %v5358_v53, 7 }
 0x17e   : > { %v6810_v13 = vrot.slane %v5360_v54, 1  ;;  %v5367_v15 = vpack.c.bf16 %v5360_v54, %v778_v41  ;;  %v6809_v25 = vrot.slane %v5360_v54, 7  ;;  %v6808_v37 = vrot.slane %v5358_v53, 1 }
 0x17f   : > { %v842_v27 = vrot.slane %v777_v7, 7  ;;  %v939_v31 = vrot.slane %v777_v7, 1  ;;  %v5371_v33 = vpack.c.bf16 %v777_v7, %v776_v47  ;;  %v936_v34 = vsel %vm840_vm0, 0.0, %v841_v5  ;;  %v4985_v47 = vld [vmem:[%s6796_s2 + $0x180] sm:$0xff]  }
 0x180   : > { %v5377_v35 = vsel %vm937_vm1, %v941_v1, %v6810_v13  ;;  %v5385_v38 = vmax.f32 %v763_v58, 0.0  ;;  %v6895_v11 = vrot.slane %v5360_v54, 7 }
 0x181   : > { %v843_v39 = vsel %vm840_vm0, %v841_v5, %v842_v27  ;;  %1578 = vmatprep.mubr.bf16.mxu1 %v5371_v33  ;;  %v940_v40 = vsel %vm937_vm1, %v938_v9, %v939_v31  ;;  %v942_v41 = vsel %vm937_vm1, %v939_v31, %v941_v1  ;;  %v845_v0 = vsel %vm840_vm0, %v842_v27, %v844_v61 }
 0x182   : > { %v5400_v51 = vpack.c.bf16 %v843_v39, %v936_v34  ;;  %v5402_v58 = vpack.c.bf16 %v942_v41, %v940_v40  ;;  %v6805_v5 = vrot.slane %v5385_v38, 7  ;;  %v6807_v7 = vrot.slane %v5385_v38, 1  ;;  %v4987_v40 = vld [vmem:[%s6796_s2 + $0x188] sm:$0xff]  }
 0x183   : > { %v5409_v1 = vmax.f32 %v760_v55, 0.0  ;;  %v847_v9 = vsel %vm840_vm0, %v844_v61, %v6809_v25  ;;  %v761_v27 = vadd.f32 %v5344_v4, %v722_v59  ;;  %v5417_v31 = vpack.c.bf16 %v5385_v38, %v5358_v53 }
 0x184   : > { %6892 = vst [vmem:[#allocation35_spill] sm:$0xff] %v5402_v58  ;;  %3779 = vmatmul.mubr.msk.bf16.vlgmr.msra.gmra.mrb[16].mxu1 %vm5380_vm5, %v5400_v51  ;;  %4573 = vmatprep.mubr.msk.bf16.mxu0 %vm5392_vm6, %v5402_v58  ;;  %v5425_v55 = vpack.c.bf16 %v847_v9, %v845_v0  ;;  %v5432_v59 = vsel %vm937_vm1, %v6808_v37, %v6807_v7 }
 0x185   : > { %v5439_v61 = vsel %vm840_vm0, %v6806_v21, %v6805_v5  ;;  %v4531_v34 = vpop.f32.mrb[4].mxu0  ;;  %1586 = vmatprep.mubr.bf16.mxu1 %v5367_v15  ;;  %v5442_v39 = vmax.f32 %v761_v27, 0.0  ;;  %4350 = vmatpush3.bf16.msra.mxu1 %v4985_v47  ;;  %v4988_v5 = vld [vmem:[%s6796_s2 + $0x1d0] sm:$0xff]  }
 0x186   : > { %v711_v41 = vmul.f32 %v4531_v34, %v5339_v63  ;;  %v587_v0 = vpop.f32.mrb[5].mxu0  ;;  %v4547_v9 = vpop.f32.mrb[4].mxu1  ;;  %4351 = vmatprep.subr.bf16.mxu1 %v4986_v19 }
 0x187   : > { %v709_v21 = vmul.f32 %v5339_v63, %v587_v0  ;;  %v4532_v7 = vpop.f32.mrb[6].mxu0  ;;  %v727_v37 = vmul.f32 %v4547_v9, %v5339_v63  ;;  %v651_v25 = vpop.f32.mrb[5].mxu1  ;;  %v5460_v26 = vpack.c.bf16 %v5442_v39, %v5409_v1 }
 0x188   : > { %v750_v13 = vadd.f32 %v5344_v4, %v711_v41  ;;  %v712_v34 = vmul.f32 %v4532_v7, %v5339_v63  ;;  %v590_v32 = vpop.f32.mrb[7].mxu0  ;;  %v725_v19 = vmul.f32 %v5339_v63, %v651_v25  ;;  %v4548_v29 = vpop.f32.mrb[6].mxu1  ;;  %v4989_v7 = vld [vmem:[%s6796_s2 + $0x190] sm:$0xff]  }
 0x189   : > { %v748_v0 = vadd.f32 %v5344_v4, %v709_v21  ;;  %v710_v27 = vmul.f32 %v5339_v63, %v590_v32  ;;  %v766_v47 = vadd.f32 %v5344_v4, %v727_v37  ;;  %v728_v9 = vmul.f32 %v4548_v29, %v5339_v63  ;;  %v654_v23 = vpop.f32.mrb[7].mxu1  ;;  %4352 = vmatpush3.bf16.msra.mxu1 %v4987_v40  ;;  %v4990_v32 = vld [vmem:[%s6796_s2 + $0x1d8] sm:$0xff]  }
 0x18a   : > { %v782_v25 = vmax.f32 %v750_v13, 0.0  ;;  %v751_v41 = vadd.f32 %v5344_v4, %v712_v34  ;;  %v764_v20 = vadd.f32 %v5344_v4, %v725_v19  ;;  %v726_v17 = vmul.f32 %v5339_v63, %v654_v23  ;;  %4353 = vmatprep.subr.bf16.mxu1 %v4988_v5 }
 0x18b   : > { %v780_v21 = vmax.f32 %v748_v0, 0.0  ;;  %v749_v29 = vadd.f32 %v5344_v4, %v710_v27  ;;  %v5476_v37 = vmax.f32 %v766_v47, 0.0  ;;  %v767_v40 = vadd.f32 %v5344_v4, %v728_v9  ;;  %v4992_v47 = vld [vmem:[%s6796_s2 + $0x198] sm:$0xff]  }
 0x18c   : > { %v5479_v14 = vmax.f32 %v751_v41, 0.0  ;;  %3782 = vmatmul.mubr.msk.bf16.gmra.mrb[20].mxu1 %vm5380_vm5, %v5425_v55  ;;  %v971_v13 = vrot.slane %v5442_v39, 1  ;;  %v5486_v5 = vmax.f32 %v764_v20, 0.0  ;;  %v852_v34 = vrot.slane %v782_v25, 7 }
 0x18d   : > { %v848_v19 = vrot.slane %v780_v21, 7  ;;  %v945_v0 = vrot.slane %v780_v21, 1  ;;  %v781_v27 = vmax.f32 %v749_v29, 0.0  ;;  %4354 = vmatpush3.bf16.msra.mxu1 %v4989_v7  ;;  %v949_v9 = vrot.slane %v782_v25, 1  ;;  %v4968_v29 = vld [vmem:[%s6796_s2] sm:$0xff]  }
 0x18e   : > { %4355 = vmatprep.subr.bf16.mxu1 %v4990_v32  ;;  %v6893_v20 = vrot.slane %v5360_v54, 1  ;;  %v977_v7 = vrot.slane %v5486_v5, 1  ;;  %v5504_v41 = vmax.f32 %v767_v40, 0.0  ;;  %v765_v23 = vadd.f32 %v5344_v4, %v726_v17  ;;  %v4993_v54 = vld [vmem:[%s6796_s2 + $0x1e0] sm:$0xff]  }
 0x18f   : > { %v850_v30 = vrot.slane %v781_v27, 7  ;;  %v947_v3 = vrot.slane %v781_v27, 1  ;;  %v5507_v32 = vpack.c.bf16 %v781_v27, %v780_v21  ;;  %v849_v62 = vsel %vm840_vm0, %v6895_v11, %v848_v19 }
 0x190   : > { %v946_v8 = vsel %vm937_vm1, %v6893_v20, %v945_v0  ;;  %v4969_v20 = vld [vmem:[%s6796_s2 + $0x48] sm:$0xff]   ;;  %v5520_v21 = vmax.f32 %v765_v23, 0.0  ;;  %v5534_v40 = vpack.c.bf16 %v5479_v14, %v782_v25 }
 0x191   : > { %v5502_v28 = vpack.c.bf16 %v946_v8, %v5377_v35  ;;  %v851_v24 = vsel %vm840_vm0, %v848_v19, %v850_v30  ;;  %v948_v57 = vsel %vm937_vm1, %v945_v0, %v947_v3  ;;  %v950_v8 = vsel %vm937_vm1, %v947_v3, %v949_v9  ;;  %4356 = vmatpush3.bf16.msra.mxu1 %v4992_v47 }
 0x192   : > { %1594 = vmatprep.mubr.bf16.mxu1 %v5507_v32  ;;  %v5526_v11 = vpack.c.bf16 %v851_v24, %v849_v62  ;;  %v5531_v3 = vpack.c.bf16 %v950_v8, %v948_v57  ;;  %v853_v23 = vsel %vm840_vm0, %v850_v30, %v852_v34  ;;  %v6897_v19 = vrot.slane %v5479_v14, 7  ;;  %v4970_v62 = vld [vmem:[%s6796_s2 + $0x8] sm:$0xff]   ;;  %4357 = vmatprep.subr.bf16.mxu1 %v4993_v54 }
 0x193   : > { %6894 = vst [vmem:[#allocation36_spill] sm:$0xff] %v5502_v28  ;;  %4574 = vmatmul.mubr.msk.bf16.vlgmr.msra.gmra.mrb[16].mxu0 %vm5392_vm6, %v5502_v28  ;;  %v979_v27 = vrot.slane %v5520_v21, 1  ;;  %v6898_v30 = vrot.slane %v5479_v14, 1  ;;  %v6899_v8 = vrot.slane %v5409_v1, 1  ;;  %v6903_v54 = vrot.slane %v5442_v39, 7 }
 0x194   : > { %6896 = vst [vmem:[#allocation37_spill] sm:$0xff] %v5531_v3  ;;  %v855_v0 = vsel %vm840_vm0, %v852_v34, %v6897_v19  ;;  %4214 = vmatpush3.bf16.msra.mxu0 %v4968_v29  ;;  %3785 = vmatmul.mubr.msk.bf16.gmra.mrb[24].mxu1 %vm5380_vm5, %v5526_v11  ;;  %v4971_v34 = vld [vmem:[%s6796_s2 + $0x50] sm:$0xff]   ;;  %v6901_v19 = vrot.slane %v5385_v38, 1 }
 0x195   : > { %v5548_v57 = vpack.c.bf16 %v855_v0, %v853_v23  ;;  %v5553_v25 = vsel %vm937_vm1, %v949_v9, %v6898_v30  ;;  %4215 = vmatprep.subr.bf16.mxu0 %v4969_v20  ;;  %4577 = vmatprep.mubr.msk.bf16.mxu0 %vm5392_vm6, %v5531_v3  ;;  %v4535_v29 = vpop.f32.mrb[8].mxu0  ;;  %v972_v23 = vsel %vm937_vm1, %v6899_v8, %v971_v13  ;;  %v6900_v9 = vrot.slane %v5358_v53, 1  ;;  %v4994_v30 = vld [vmem:[%s6796_s2 + $0x1a0] sm:$0xff]  }
 0x196   : > { %1602 = vmatprep.mubr.bf16.mxu1 %v5534_v40  ;;  %v978_v0 = vsel %vm937_vm1, %v6901_v19, %v977_v7  ;;  %v715_v24 = vmul.f32 %v4535_v29, %v5339_v63  ;;  %v603_v17 = vpop.f32.mrb[9].mxu0  ;;  %v4551_v47 = vpop.f32.mrb[8].mxu1  ;;  %v980_v22 = vsel %vm937_vm1, %v977_v7, %v979_v27  ;;  %4358 = vmatpush3.bf16.msra.mxu1 %v4994_v30 }
 0x197   : > { %v974_v20 = vsel %vm937_vm1, %v971_v13, %v6900_v9  ;;  %v5579_v8 = vpack.c.bf16 %v978_v0, %v5432_v59  ;;  %v4995_v13 = vld [vmem:[%s6796_s2 + $0x1e8] sm:$0xff]   ;;  %v713_v9 = vmul.f32 %v5339_v63, %v603_v17  ;;  %v4536_v19 = vpop.f32.mrb[10].mxu0  ;;  %v731_v52 = vmul.f32 %v4551_v47, %v5339_v63  ;;  %v667_v29 = vpop.f32.mrb[9].mxu1 }
 0x198   : > { %v5576_v35 = vpack.c.bf16 %v974_v20, %v972_v23  ;;  %4216 = vmatpush3.bf16.msra.mxu0 %v4970_v62  ;;  %v4972_v23 = vld [vmem:[%s6796_s2 + $0x10] sm:$0xff]   ;;  %v6902_v59 = vrot.slane %v5476_v37, 1  ;;  %v6904_v20 = vrot.slane %v5409_v1, 7  ;;  %v754_v17 = vadd.f32 %v5344_v4, %v715_v24  ;;  %v606_v62 = vpop.f32.mrb[11].mxu0  ;;  %v4552_v49 = vpop.f32.mrb[10].mxu1  ;;  %4359 = vmatprep.subr.bf16.mxu1 %v4995_v13 }
 0x199   : > { %v716_v47 = vmul.f32 %v4536_v19, %v5339_v63  ;;  %v729_v18 = vmul.f32 %v5339_v63, %v667_v29  ;;  %4217 = vmatprep.subr.bf16.mxu0 %v4971_v34  ;;  %v752_v16 = vadd.f32 %v5344_v4, %v713_v9  ;;  %v732_v24 = vmul.f32 %v4552_v49, %v5339_v63  ;;  %v670_v19 = vpop.f32.mrb[11].mxu1  ;;  %v4996_v34 = vld [vmem:[%s6796_s2 + $0x1a8] sm:$0xff]  }
 0x19a   : > { %v982_v7 = vsel %vm937_vm1, %v979_v27, %v6902_v59  ;;  %v5598_v0 = vsel %vm840_vm0, %v6904_v20, %v6903_v54  ;;  %v4973_v27 = vld [vmem:[%s6796_s2 + $0x58] sm:$0xff]   ;;  %v714_v54 = vmul.f32 %v5339_v63, %v606_v62  ;;  %v770_v20 = vadd.f32 %v5344_v4, %v731_v52  ;;  %v4997_v52 = vld [vmem:[%s6796_s2 + $0x1f0] sm:$0xff]   ;;  %4360 = vmatpush3.bf16.msra.mxu1 %v4996_v34  ;;  %v4976_v34 = vld [vmem:[%s6796_s2 + $0x20] sm:$0xff]  }
 0x19b   : > { %v5606_v59 = vpack.c.bf16 %v982_v7, %v980_v22  ;;  %v5615_v29 = vmax.f32 %v754_v17, 0.0  ;;  %v755_v46 = vadd.f32 %v5344_v4, %v716_v47  ;;  %v768_v22 = vadd.f32 %v5344_v4, %v729_v18  ;;  %v4974_v17 = vld [vmem:[%s6796_s2 + $0x18] sm:$0xff]   ;;  %4361 = vmatprep.subr.bf16.mxu1 %v4997_v52 }
 0x19c   : > { %v730_v9 = vmul.f32 %v5339_v63, %v670_v19  ;;  %v784_v49 = vmax.f32 %v752_v16, 0.0  ;;  %v753_v30 = vadd.f32 %v5344_v4, %v714_v54  ;;  %v5624_v7 = vmax.f32 %v770_v20, 0.0  ;;  %4218 = vmatpush3.bf16.msra.mxu0 %v4972_v23  ;;  %3788 = vmatmul.mubr.msk.bf16.gmra.mrb[28].mxu1 %vm5380_vm5, %v5548_v57  ;;  %v4975_v23 = vld [vmem:[%s6796_s2 + $0x60] sm:$0xff]  }
 0x19d   : > { %v771_v62 = vadd.f32 %v5344_v4, %v732_v24  ;;  %v860_v13 = vrot.slane %v5615_v29, 7  ;;  %v5632_v47 = vmax.f32 %v755_v46, 0.0  ;;  %v5637_v16 = vmax.f32 %v768_v22, 0.0  ;;  %4219 = vmatprep.subr.bf16.mxu0 %v4973_v27  ;;  %v4998_v46 = vld [vmem:[%s6796_s2 + $0x1b0] sm:$0xff]  }
 0x19e   : > { %v957_v54 = vrot.slane %v5615_v29, 1  ;;  %v856_v20 = vrot.slane %v784_v49, 7  ;;  %v953_v24 = vrot.slane %v784_v49, 1  ;;  %v785_v19 = vmax.f32 %v753_v30, 0.0  ;;  %4362 = vmatpush3.bf16.msra.mxu1 %v4998_v46 }
 0x19f   : > { %v5654_v6 = vmax.f32 %v771_v62, 0.0  ;;  %v769_v18 = vadd.f32 %v5344_v4, %v730_v9  ;;  %v6905_v27 = vrot.slane %v5479_v14, 1  ;;  %v6906_v52 = vrot.slane %v5479_v14, 7  ;;  %4363 = vmatprep.subr.bf16.mxu1 %v4999_v43  ;;  %v5001_v43 = vld [vmem:[%s6796_s2 + $0x1b8] sm:$0xff]  }
 0x1a0   : > { %v858_v10 = vrot.slane %v785_v19, 7  ;;  %v955_v30 = vrot.slane %v785_v19, 1  ;;  %4220 = vmatpush3.bf16.msra.mxu0 %v4974_v17  ;;  %v5657_v2 = vpack.c.bf16 %v785_v19, %v784_v49  ;;  %v985_v62 = vrot.slane %v5637_v16, 1 }
 0x1a1   : > { %v954_v12 = vsel %vm937_vm1, %v6905_v27, %v953_v24  ;;  %v857_v22 = vsel %vm840_vm0, %v6906_v52, %v856_v20  ;;  %4221 = vmatprep.subr.bf16.mxu0 %v4975_v23  ;;  %v5674_v19 = vmax.f32 %v769_v18, 0.0  ;;  %v4977_v52 = vld [vmem:[%s6796_s2 + $0x68] sm:$0xff]   ;;  %v6920_v58 = vrot.slane %v5632_v47, 7 }
 0x1a2   : > { %v5671_v9 = vpack.c.bf16 %v954_v12, %v5553_v25  ;;  %v859_v49 = vsel %vm840_vm0, %v856_v20, %v858_v10  ;;  %1610 = vmatprep.mubr.bf16.mxu1 %v5657_v2  ;;  %v956_v23 = vsel %vm937_vm1, %v953_v24, %v955_v30  ;;  %v958_v27 = vsel %vm937_vm1, %v955_v30, %v957_v54 }
 0x1a3   : > { %v5677_v14 = vpack.c.bf16 %v859_v49, %v857_v22  ;;  %v5687_v12 = vpack.c.bf16 %v958_v27, %v956_v23  ;;  %v5691_v25 = vpack.c.bf16 %v5632_v47, %v5615_v29  ;;  %v861_v18 = vsel %vm840_vm0, %v858_v10, %v860_v13  ;;  %v4979_v49 = vld [vmem:[%s6796_s2 + $0x70] sm:$0xff]   ;;  %4364 = vmatpush3.bf16.msra.mxu1 %v5001_v43 }
 0x1a4   : > { %6907 = vst [vmem:[#allocation38_spill] sm:$0xff] %v5671_v9  ;;  %4578 = vmatmul.mubr.msk.bf16.gmra.mrb[20].mxu0 %vm5392_vm6, %v5671_v9  ;;  %v6910_v20 = vrot.slane %v5632_v47, 7  ;;  %v987_v22 = vrot.slane %v5674_v19, 1  ;;  %v6912_v10 = vrot.slane %v5632_v47, 1  ;;  %v6913_v27 = vrot.slane %v5504_v41, 1 }
 0x1a5   : > { %6908 = vst [vmem:[#allocation39_spill] sm:$0xff] %v5687_v12  ;;  %6909 = vst [vmem:[#allocation40_spill] sm:$0xff] %v5691_v25  ;;  %3791 = vmatmul.mubr.msk.bf16.gmra.mrb[32].mxu1 %vm5380_vm5, %v5677_v14  ;;  %4222 = vmatpush3.bf16.msra.mxu0 %v4976_v34  ;;  %v4539_v23 = vpop.f32.mrb[12].mxu0 }
 0x1a6   : > { %v863_v24 = vsel %vm840_vm0, %v860_v13, %v6910_v20  ;;  %v5710_v30 = vsel %vm937_vm1, %v957_v54, %v6912_v10  ;;  %v4978_v13 = vld [vmem:[%s6796_s2 + $0x28] sm:$0xff]   ;;  %4581 = vmatprep.mubr.msk.bf16.mxu0 %vm5392_vm6, %v5687_v12  ;;  %1618 = vmatprep.mubr.bf16.mxu1 %v5691_v25  ;;  %v6915_v34 = vmov %v6913_v27  ;;  %v6917_v10 = vrot.slane %v5442_v39, 7  ;;  %v619_v60 = vpop.f32.mrb[13].mxu0  ;;  %v4555_v56 = vpop.f32.mrb[12].mxu1 }
 0x1a7   : > { %v5705_v29 = vpack.c.bf16 %v863_v24, %v861_v18  ;;  %v6914_v18 = vrot.slane %v5476_v37, 1  ;;  %v986_v20 = vsel %vm937_vm1, %v6915_v34, %v985_v62  ;;  %v6916_v24 = vrot.slane %v5358_v53, 7  ;;  %4223 = vmatprep.subr.bf16.mxu0 %v4977_v52  ;;  %v683_v50 = vpop.f32.mrb[13].mxu1 }
 0x1a8   : > { %v719_v46 = vmul.f32 %v4539_v23, %v5339_v63  ;;  %v6918_v34 = vrot.slane %v5624_v7, 1  ;;  %v717_v39 = vmul.f32 %v5339_v63, %v619_v60  ;;  %v5755_v60 = vpack.c.bf16 %v5520_v21, %v5486_v5 }
 0x1a9   : > { %6911 = vst [vmem:[#allocation41_spill] sm:$0xff] %v5705_v29  ;;  %v984_v54 = vsel %vm937_vm1, %v6914_v18, %v6913_v27  ;;  %v877_v17 = vsel %vm840_vm0, %v6917_v10, %v6916_v24  ;;  %v988_v18 = vsel %vm937_vm1, %v985_v62, %v987_v22  ;;  %v4540_v24 = vpop.f32.mrb[14].mxu0  ;;  %v735_v10 = vmul.f32 %v4555_v56, %v5339_v63  ;;  %v4980_v56 = vld [vmem:[%s6796_s2 + $0x30] sm:$0xff]  }
 0x1aa   : > { %v5737_v27 = vpack.c.bf16 %v986_v20, %v984_v54  ;;  %v990_v53 = vsel %vm937_vm1, %v987_v22, %v6918_v34  ;;  %v5748_v23 = vpack.c.bf16 %v5439_v61, %v877_v17  ;;  %v758_v52 = vadd.f32 %v5344_v4, %v719_v46  ;;  %v622_v54 = vpop.f32.mrb[15].mxu0  ;;  %v4556_v22 = vpop.f32.mrb[14].mxu1  ;;  %4224 = vmatpush3.bf16.msra.mxu0 %v4978_v13 }
 0x1ab   : > { %v5745_v48 = vpack.c.bf16 %v990_v53, %v988_v18  ;;  %v720_v62 = vmul.f32 %v4540_v24, %v5339_v63  ;;  %v733_v20 = vmul.f32 %v5339_v63, %v683_v50  ;;  %v756_v61 = vadd.f32 %v5344_v4, %v717_v39  ;;  %v686_v18 = vpop.f32.mrb[15].mxu1  ;;  %4225 = vmatprep.subr.bf16.mxu0 %v4979_v49  ;;  %v4981_v50 = vld [vmem:[%s6796_s2 + $0x78] sm:$0xff]  }
 0x1ac   : > { %v718_v17 = vmul.f32 %v5339_v63, %v622_v54  ;;  %v774_v43 = vadd.f32 %v5344_v4, %v735_v10  ;;  %v736_v46 = vmul.f32 %v4556_v22, %v5339_v63  ;;  %v790_v13 = vmax.f32 %v758_v52, 0.0 }
 0x1ad   : > { %v759_v34 = vadd.f32 %v5344_v4, %v720_v62  ;;  %v772_v53 = vadd.f32 %v5344_v4, %v733_v20  ;;  %v734_v24 = vmul.f32 %v5339_v63, %v686_v18  ;;  %v788_v39 = vmax.f32 %v756_v61, 0.0  ;;  %3794 = vmatmul.mubr.msk.bf16.gmra.mrb[36].mxu1 %vm5380_vm5, %v5705_v29  ;;  %v4982_v63 = vld [vmem:[%s6796_s2 + $0x38] sm:$0xff]  }
 0x1ae   : > { %v757_v54 = vadd.f32 %v5344_v4, %v718_v17  ;;  %v5771_v44 = vmax.f32 %v774_v43, 0.0  ;;  %v775_v10 = vadd.f32 %v5344_v4, %v736_v46  ;;  %v868_v22 = vrot.slane %v790_v13, 7  ;;  %4226 = vmatpush3.bf16.msra.mxu0 %v4980_v56  ;;  %v5786_v43 = vld [vmem:[%s6796_s2 + $0x80] sm:$0xff]  }
 0x1af   : > { %v965_v49 = vrot.slane %v790_v13, 1  ;;  %v791_v42 = vmax.f32 %v759_v34, 0.0  ;;  %v5777_v52 = vmax.f32 %v772_v53, 0.0  ;;  %v864_v62 = vrot.slane %v788_v39, 7  ;;  %4227 = vmatprep.subr.bf16.mxu0 %v4981_v50 }
 0x1b0   : > { %v961_v20 = vrot.slane %v788_v39, 1  ;;  %v789_v61 = vmax.f32 %v757_v54, 0.0  ;;  %v997_v34 = vrot.slane %v5771_v44, 1  ;;  %v5791_v3 = vmax.f32 %v775_v10, 0.0 }
 0x1b1   : > { %v870_v46 = vrot.slane %v791_v42, 7  ;;  %v967_v18 = vrot.slane %v791_v42, 1  ;;  %v993_v9 = vrot.slane %v5777_v52, 1  ;;  %v773_v54 = vadd.f32 %v5344_v4, %v734_v24 }
 0x1b2   : > { %v866_v53 = vrot.slane %v789_v61, 7  ;;  %v963_v12 = vrot.slane %v789_v61, 1  ;;  %v5794_v50 = vpack.c.bf16 %v789_v61, %v788_v39  ;;  %v6919_v17 = vrot.slane %v5632_v47, 1  ;;  %4228 = vmatpush3.bf16.msra.mxu0 %v4982_v63 }
 0x1b3   : > { %v865_v29 = vsel %vm840_vm0, %v6920_v58, %v864_v62  ;;  %v902_v56 = vrot.slane %v5791_v3, 7  ;;  %v999_v25 = vrot.slane %v5791_v3, 1  ;;  %4605 = vmatprep.subr.bf16.mxu0 %v5786_v43  ;;  %v805_v24 = vmax.f32 %v773_v54, 0.0 }
 0x1b4   : > { %v962_v28 = vsel %vm937_vm1, %v6919_v17, %v961_v20  ;;  %v867_v4 = vsel %vm840_vm0, %v864_v62, %v866_v53  ;;  %1626 = vmatprep.mubr.bf16.mxu1 %v5794_v50  ;;  %v964_v47 = vsel %vm937_vm1, %v961_v20, %v963_v12  ;;  %v966_v58 = vsel %vm937_vm1, %v963_v12, %v965_v49 }
 0x1b5   : > { %v5805_v10 = vpack.c.bf16 %v962_v28, %v5710_v30  ;;  %v5810_v39 = vpack.c.bf16 %v867_v4, %v865_v29  ;;  %v5817_v63 = vpack.c.bf16 %v966_v58, %v964_v47  ;;  %v5819_v28 = vpack.c.bf16 %v791_v42, %v790_v13 }
 0x1b6   : > { %v968_v30 = vsel %vm937_vm1, %v965_v49, %v967_v18  ;;  %v6921_v62 = vrot.slane %v5409_v1, 1  ;;  %v898_v29 = vrot.slane %v805_v24, 7  ;;  %v995_v17 = vrot.slane %v805_v24, 1 }
 0x1b7   : > { %4582 = vmatmul.mubr.msk.bf16.gmra.mrb[24].mxu0 %vm5392_vm6, %v5805_v10  ;;  %3797 = vmatmul.mubr.msk.bf16.gmra.mrb[40].mxu1 %vm5380_vm5, %v5810_v39  ;;  %v869_v20 = vsel %vm840_vm0, %v866_v53, %v868_v22  ;;  %v871_v42 = vsel %vm840_vm0, %v868_v22, %v870_v46  ;;  %v6922_v13 = vrot.slane %v5409_v1, 7  ;;  %v6924_v54 = vrot.slane %v5624_v7, 1 }
 0x1b8   : > { %v970_v61 = vsel %vm937_vm1, %v967_v18, %v6921_v62  ;;  %4585 = vmatprep.mubr.msk.bf16.mxu0 %vm5392_vm6, %v5817_v63  ;;  %1634 = vmatprep.mubr.bf16.mxu1 %v5819_v28  ;;  %v6923_v18 = vrot.slane %v5654_v6, 1  ;;  %v1033_v53 = vsel %vm937_vm1, %v999_v25, 0.0  ;;  %v5845_v47 = vpack.c.bf16 %v871_v42, %v869_v20 }
 0x1b9   : > { %v5828_v12 = vpack.c.bf16 %v970_v61, %v968_v30  ;;  %v873_v49 = vsel %vm840_vm0, %v870_v46, %v6922_v13  ;;  %v996_v1 = vsel %vm937_vm1, %v993_v9, %v995_v17  ;;  %v998_v62 = vsel %vm937_vm1, %v995_v17, %v997_v34 }
 0x1ba   : > { %v992_v4 = vsel %vm937_vm1, %v6924_v54, %v6923_v18  ;;  %v5848_v58 = vpack.c.bf16 %v5598_v0, %v873_v49  ;;  %v6925_v30 = vmov %v6923_v18  ;;  %v6926_v61 = vrot.slane %v5486_v5, 7 }
 0x1bb   : > { %v994_v22 = vsel %vm937_vm1, %v6925_v30, %v993_v9  ;;  %v6927_v13 = vrot.slane %v5385_v38, 7  ;;  %v6928_v42 = vrot.slane %v5520_v21, 7  ;;  %v5867_v18 = vpack.c.bf16 %v998_v62, %v996_v1 }
 0x1bc   : > { %v5854_v46 = vpack.c.bf16 %v994_v22, %v992_v4  ;;  %v6929_v0 = vmov %v6926_v61  ;;  %v5873_v9 = vpack.c.bf16 %v5504_v41, %v5476_v37  ;;  %v1000_v17 = vsel %vm937_vm1, %v997_v34, %v999_v25 }
 0x1bd   : > { %v881_v20 = vsel %vm840_vm0, %v6927_v13, %v6926_v61  ;;  %v883_v49 = vsel %vm840_vm0, %v6929_v0, %v6928_v42  ;;  %v5876_v4 = vpack.c.bf16 %v1033_v53, %v1000_v17  ;;  %v6930_v38 = vrot.slane %v5476_v37, 7 }
 0x1be   : > { %v5869_v54 = vpack.c.bf16 %v883_v49, %v881_v20  ;;  %v6931_v30 = vmov %v6928_v42  ;;  %v6932_v22 = vrot.slane %v5504_v41, 7  ;;  %v5890_v61 = vpack.c.bf16 %v5674_v19, %v5637_v16 }
 0x1bf   : > { %v885_v5 = vsel %vm840_vm0, %v6931_v30, %v6930_v38  ;;  %v6933_v1 = vmov %v6930_v38  ;;  %v6934_v25 = vrot.slane %v5637_v16, 7  ;;  %v6936_v53 = vrot.slane %v5674_v19, 7  ;;  %4586 = vmatmul.mubr.msk.bf16.gmra.mrb[28].mxu0 %vm5392_vm6, %v5828_v12  ;;  %3800 = vmatmul.mubr.msk.bf16.gmra.mrb[44].mxu1 %vm5380_vm5, %v5845_v47 }
 0x1c0   : > { %v887_v62 = vsel %vm840_vm0, %v6933_v1, %v6932_v22  ;;  %v6935_v34 = vmov %v6932_v22  ;;  %v5906_v42 = vpack.c.bf16 %v5654_v6, %v5624_v7  ;;  %v6938_v41 = vrot.slane %v5624_v7, 7  ;;  %4589 = vmatprep.mubr.msk.bf16.mxu0 %vm5392_vm6, %v5576_v35  ;;  %1642 = vmatprep.mubr.bf16.mxu1 %v5460_v26 }
 0x1c1   : > { %v5892_v13 = vpack.c.bf16 %v887_v62, %v885_v5  ;;  %v889_v21 = vsel %vm840_vm0, %v6935_v34, %v6934_v25  ;;  %v6937_v20 = vmov %v6934_v25  ;;  %v6939_v49 = vmov %v6936_v53 }
 0x1c2   : > { %v891_v37 = vsel %vm840_vm0, %v6937_v20, %v6936_v53  ;;  %v893_v17 = vsel %vm840_vm0, %v6939_v49, %v6938_v41  ;;  %v6940_v16 = vrot.slane %v5654_v6, 7  ;;  %v6941_v38 = vmov %v6938_v41  ;;  %v6049_v41 = vld [vmem:[%s6796_s2 + $0x200] sm:$0xff]   ;;  %v6948_v49 = vld [vmem:[#allocation41_spill] sm:$0xff] }
 0x1c3   : > { %v5911_v0 = vpack.c.bf16 %v891_v37, %v889_v21  ;;  %v5924_v5 = vpack.c.bf16 %v805_v24, %v5777_v52  ;;  %v6942_v22 = vrot.slane %v5777_v52, 7  ;;  %v5947_v34 = vpack.c.bf16 %v5791_v3, %v5771_v44  ;;  %v4991_v3 = vld [vmem:[%s6796_s2 + $0x88] sm:$0xff]   ;;  %v5000_v52 = vld [vmem:[%s6796_s2 + $0x90] sm:$0xff]  }
 0x1c4   : > { %v895_v30 = vsel %vm840_vm0, %v6941_v38, %v6940_v16  ;;  %v6943_v1 = vmov %v6940_v16  ;;  %v6945_v21 = vrot.slane %v5771_v44, 7  ;;  %v5032_v44 = vmov 0   ;;  %v6951_v16 = vld [vmem:[#allocation37_spill] sm:$0xff]  ;;  %v6952_v38 = vld [vmem:[#allocation38_spill] sm:$0xff] }
 0x1c5   : > { %v5932_v19 = vpack.c.bf16 %v895_v30, %v893_v17  ;;  %v897_v7 = vsel %vm840_vm0, %v6943_v1, %v6942_v22  ;;  %v6944_v62 = vmov %v6942_v22  ;;  %v5011_v30 = vld [vmem:[%s6796_s2 + $0x220] sm:$0xff]  }
 0x1c6   : > { %v899_v24 = vsel %vm840_vm0, %v6944_v62, %v898_v29  ;;  %v901_v53 = vsel %vm840_vm0, %v898_v29, %v6945_v21  ;;  %v6946_v6 = vmov %v6945_v21  ;;  %v5006_v29 = vld [vmem:[%s6796_s2 + $0xb8] sm:$0xff]  }
 0x1c7   : > { %v5943_v25 = vpack.c.bf16 %v899_v24, %v897_v7  ;;  %v903_v20 = vsel %vm840_vm0, %v6946_v6, %v902_v56  ;;  %4590 = vmatmul.mubr.msk.bf16.gmra.mrb[32].mxu0 %vm5392_vm6, %v5579_v8  ;;  %3803 = vmatmul.mubr.msk.bf16.gmra.mrb[48].mxu1 %vm5380_vm5, %v5848_v58  ;;  %v5002_v56 = vld [vmem:[%s6796_s2 + $0x98] sm:$0xff]   ;;  %v5012_v7 = vld [vmem:[%s6796_s2 + $0x228] sm:$0xff]  }
 0x1c8   : > { %v5955_v37 = vpack.c.bf16 %v903_v20, %v901_v53  ;;  %4593 = vmatprep.mubr.msk.bf16.mxu0 %vm5392_vm6, %v5606_v59  ;;  %1650 = vmatprep.mubr.bf16.mxu1 %v5417_v31 }
 0x1cf   : > { %4594 = vmatmul.mubr.msk.bf16.gmra.mrb[36].mxu0 %vm5392_vm6, %v5737_v27  ;;  %3806 = vmatmul.mubr.msk.bf16.gmra.mrb[52].mxu1 %vm5380_vm5, %v5748_v23 }
 0x1d0   : > { %4597 = vmatprep.mubr.msk.bf16.mxu0 %vm5392_vm6, %v5745_v48  ;;  %1658 = vmatprep.mubr.bf16.mxu1 %v5755_v60 }
 0x1d7   : > { %4598 = vmatmul.mubr.msk.bf16.gmra.mrb[40].mxu0 %vm5392_vm6, %v5854_v46  ;;  %3809 = vmatmul.mubr.msk.bf16.gmra.mrb[56].mxu1 %vm5380_vm5, %v5869_v54 }
 0x1d8   : > { %4601 = vmatprep.mubr.msk.bf16.mxu0 %vm5392_vm6, %v5867_v18  ;;  %1666 = vmatprep.mubr.bf16.mxu1 %v5873_v9 }
 0x1df   : > { %4602 = vmatmul.mubr.msk.bf16.gmra.mrb[44].mxu0 %vm5392_vm6, %v5876_v4  ;;  %3812 = vmatmul.mubr.msk.bf16.gmra.mrb[60].mxu1 %vm5380_vm5, %v5892_v13 }
 0x1e0   : > { %2044 = vmatprep.mubr.bf16.mxu0 %v5032_v44  ;;  %1674 = vmatprep.mubr.bf16.mxu1 %v5890_v61 }
 0x1e7   : > { %2045 = vmatmul.mubr.bf16.vlgmr.msra.gmra.mrb[48].mxu0 %v5032_v44  ;;  %3815 = vmatmul.mubr.msk.bf16.gmra.mrb[64].mxu1 %vm5380_vm5, %v5911_v0 }
 0x1e8   : > { %4606 = vmatpush3.bf16.msra.mxu0 %v5786_v43  ;;  %2052 = vmatprep.mubr.bf16.mxu0 %v5371_v33  ;;  %v5003_v33 = vld [vmem:[%s6796_s2 + $0xa0] sm:$0xff]   ;;  %v5005_v43 = vld [vmem:[%s6796_s2 + $0xb0] sm:$0xff]  }
 0x1e9   : > { %4607 = vmatprep.subr.bf16.mxu0 %v4991_v3  ;;  %1682 = vmatprep.mubr.bf16.mxu1 %v5906_v42 }
 0x1ec   : > { %4608 = vmatpush3.bf16.msra.mxu0 %v4991_v3  ;;  %v5014_v3 = vld [vmem:[%s6796_s2 + $0x238] sm:$0xff]  }
 0x1ed   : > { %4609 = vmatprep.subr.bf16.mxu0 %v5000_v52 }
 0x1ef   : > { %3875 = vmatmul.mubr.msk.bf16.gmra.mrb[52].mxu0 %vm5380_vm5, %v5400_v51  ;;  %3818 = vmatmul.mubr.msk.bf16.gmra.mrb[68].mxu1 %vm5380_vm5, %v5932_v19  ;;  %v5004_v51 = vld [vmem:[%s6796_s2 + $0xa8] sm:$0xff]  }
 0x1f0   : > { %2060 = vmatprep.mubr.bf16.mxu0 %v5367_v15  ;;  %4610 = vmatpush3.bf16.msra.mxu0 %v5000_v52 }
 0x1f1   : > { %4611 = vmatprep.subr.bf16.mxu0 %v5002_v56  ;;  %1690 = vmatprep.mubr.bf16.mxu1 %v5924_v5 }
 0x1f4   : > { %4612 = vmatpush3.bf16.msra.mxu0 %v5002_v56 }
 0x1f5   : > { %4613 = vmatprep.subr.bf16.mxu0 %v5003_v33 }
 0x1f7   : > { %3878 = vmatmul.mubr.msk.bf16.gmra.mrb[56].mxu0 %vm5380_vm5, %v5425_v55  ;;  %3821 = vmatmul.mubr.msk.bf16.gmra.mrb[72].mxu1 %vm5380_vm5, %v5943_v25 }
 0x1f8   : > { %2068 = vmatprep.mubr.bf16.mxu0 %v5507_v32  ;;  %4614 = vmatpush3.bf16.msra.mxu0 %v5003_v33 }
 0x1f9   : > { %4615 = vmatprep.subr.bf16.mxu0 %v5004_v51  ;;  %1698 = vmatprep.mubr.bf16.mxu1 %v5947_v34 }
 0x1fc   : > { %4616 = vmatpush3.bf16.msra.mxu0 %v5004_v51 }
 0x1fd   : > { %4617 = vmatprep.subr.bf16.mxu0 %v5005_v43 }
 0x1ff   : > { %3881 = vmatmul.mubr.msk.bf16.gmra.mrb[60].mxu0 %vm5380_vm5, %v5526_v11  ;;  %3824 = vmatmul.mubr.msk.bf16.gmra.mrb[76].mxu1 %vm5380_vm5, %v5955_v37 }
 0x200   : > { %2076 = vmatprep.mubr.bf16.mxu0 %v5534_v40  ;;  %4618 = vmatpush3.bf16.msra.mxu0 %v5005_v43 }
 0x201   : > { %4619 = vmatprep.subr.bf16.mxu0 %v5006_v29  ;;  %2608 = vmatprep.mubr.bf16.mxu1 %v5367_v15  ;;  %v6947_v15 = vld [vmem:[#allocation40_spill] sm:$0xff] }
 0x204   : > { %4620 = vmatpush3.bf16.msra.mxu0 %v5006_v29 }
 0x205   : > { %4653 = vmatprep.subr.bf16.mxu0 %v6049_v41 }
 0x207   : > { %3884 = vmatmul.mubr.msk.bf16.gmra.mrb[64].mxu0 %vm5380_vm5, %v5548_v57  ;;  %3965 = vmatmul.mubr.msk.bf16.vlgmr.msra.gmra.mrb[80].mxu1 %vm5380_vm5, %v5425_v55 }
 0x208   : > { %2084 = vmatprep.mubr.bf16.mxu0 %v5657_v2  ;;  %2616 = vmatprep.mubr.bf16.mxu1 %v5507_v32 }
 0x20f   : > { %3887 = vmatmul.mubr.msk.bf16.gmra.mrb[68].mxu0 %vm5380_vm5, %v5677_v14  ;;  %3968 = vmatmul.mubr.msk.bf16.gmra.mrb[84].mxu1 %vm5380_vm5, %v5526_v11 }
 0x210   : > { %2092 = vmatprep.mubr.bf16.mxu0 %v6947_v15  ;;  %2624 = vmatprep.mubr.bf16.mxu1 %v5534_v40 }
 0x217   : > { %3890 = vmatmul.mubr.msk.bf16.gmra.mrb[72].mxu0 %vm5380_vm5, %v6948_v49  ;;  %3971 = vmatmul.mubr.msk.bf16.gmra.mrb[88].mxu1 %vm5380_vm5, %v5548_v57 }
 0x218   : > { %2100 = vmatprep.mubr.bf16.mxu0 %v5794_v50  ;;  %2632 = vmatprep.mubr.bf16.mxu1 %v5657_v2 }
 0x21f   : > { %3893 = vmatmul.mubr.msk.bf16.gmra.mrb[76].mxu0 %vm5380_vm5, %v5810_v39  ;;  %3974 = vmatmul.mubr.msk.bf16.gmra.mrb[92].mxu1 %vm5380_vm5, %v5677_v14 }
 0x220   : > { %2108 = vmatprep.mubr.bf16.mxu0 %v5819_v28  ;;  %2640 = vmatprep.mubr.bf16.mxu1 %v6947_v15 }
 0x227   : > { %3896 = vmatmul.mubr.msk.bf16.gmra.mrb[80].mxu0 %vm5380_vm5, %v5845_v47  ;;  %3977 = vmatmul.mubr.msk.bf16.gmra.mrb[96].mxu1 %vm5380_vm5, %v6948_v49 }
 0x228   : > { %2116 = vmatprep.mubr.bf16.mxu0 %v5460_v26  ;;  %2648 = vmatprep.mubr.bf16.mxu1 %v5794_v50 }
 0x22f   : > { %3899 = vmatmul.mubr.msk.bf16.gmra.mrb[84].mxu0 %vm5380_vm5, %v5848_v58  ;;  %3980 = vmatmul.mubr.msk.bf16.gmra.mrb[100].mxu1 %vm5380_vm5, %v5810_v39 }
 0x230   : > { %2124 = vmatprep.mubr.bf16.mxu0 %v5417_v31  ;;  %2656 = vmatprep.mubr.bf16.mxu1 %v5819_v28  ;;  %v6949_v28 = vld [vmem:[#allocation35_spill] sm:$0xff] }
 0x237   : > { %3902 = vmatmul.mubr.msk.bf16.gmra.mrb[88].mxu0 %vm5380_vm5, %v5748_v23  ;;  %3983 = vmatmul.mubr.msk.bf16.gmra.mrb[104].mxu1 %vm5380_vm5, %v5845_v47  ;;  %v6950_v47 = vld [vmem:[#allocation36_spill] sm:$0xff] }
 0x238   : > { %2132 = vmatprep.mubr.bf16.mxu0 %v5755_v60  ;;  %2664 = vmatprep.mubr.bf16.mxu1 %v5460_v26 }
 0x23f   : > { %3905 = vmatmul.mubr.msk.bf16.gmra.mrb[92].mxu0 %vm5380_vm5, %v5869_v54  ;;  %3986 = vmatmul.mubr.msk.bf16.gmra.mrb[108].mxu1 %vm5380_vm5, %v5848_v58  ;;  %v5009_v58 = vld [vmem:[%s6796_s2 + $0x210] sm:$0xff]  }
 0x240   : > { %2140 = vmatprep.mubr.bf16.mxu0 %v5873_v9  ;;  %2672 = vmatprep.mubr.bf16.mxu1 %v5417_v31 }
 0x247   : > { %3908 = vmatmul.mubr.msk.bf16.gmra.mrb[96].mxu0 %vm5380_vm5, %v5892_v13  ;;  %3989 = vmatmul.mubr.msk.bf16.gmra.mrb[112].mxu1 %vm5380_vm5, %v5748_v23 }
 0x248   : > { %2148 = vmatprep.mubr.bf16.mxu0 %v5890_v61  ;;  %2680 = vmatprep.mubr.bf16.mxu1 %v5755_v60  ;;  %v5008_v60 = vld [vmem:[%s6796_s2 + $0x208] sm:$0xff]  }
 0x24f   : > { %3911 = vmatmul.mubr.msk.bf16.gmra.mrb[100].mxu0 %vm5380_vm5, %v5911_v0  ;;  %3992 = vmatmul.mubr.msk.bf16.gmra.mrb[116].mxu1 %vm5380_vm5, %v5869_v54 }
 0x250   : > { %2156 = vmatprep.mubr.bf16.mxu0 %v5906_v42  ;;  %2688 = vmatprep.mubr.bf16.mxu1 %v5873_v9 }
 0x257   : > { %3914 = vmatmul.mubr.msk.bf16.gmra.mrb[104].mxu0 %vm5380_vm5, %v5932_v19  ;;  %3995 = vmatmul.mubr.msk.bf16.gmra.mrb[120].mxu1 %vm5380_vm5, %v5892_v13  ;;  %v4093_v2 = vpop.f32.mrb[16].mxu1 }
 0x258   : > { %2164 = vmatprep.mubr.bf16.mxu0 %v5924_v5  ;;  %2696 = vmatprep.mubr.bf16.mxu1 %v5890_v61  ;;  %v4094_v26 = vpop.f32.mrb[17].mxu1 }
 0x259   : > { %v6141_v31 = vadd.f32 %v4094_v26, %v4093_v2  ;;  %v4096_v55 = vpop.f32.mrb[18].mxu1 }
 0x25a   : > { %v4097_v32 = vpop.f32.mrb[19].mxu1 }
 0x25b   : > { %v6143_v11 = vadd.f32 %v4097_v32, %v4096_v55 }
 0x25f   : > { %3917 = vmatmul.mubr.msk.bf16.gmra.mrb[108].mxu0 %vm5380_vm5, %v5943_v25  ;;  %3998 = vmatmul.mubr.msk.bf16.gmra.mrb[124].mxu1 %vm5380_vm5, %v5911_v0  ;;  %v4099_v40 = vpop.f32.mrb[20].mxu1 }
 0x260   : > { %4621 = vmatprep.mubr.bf16.mxu0 %v5032_v44  ;;  %2704 = vmatprep.mubr.bf16.mxu1 %v5906_v42  ;;  %v4100_v57 = vpop.f32.mrb[21].mxu1  ;;  %v5010_v42 = vld [vmem:[%s6796_s2 + $0x218] sm:$0xff]  }
 0x261   : > { %v6153_v14 = vadd.f32 %v4100_v57, %v4099_v40  ;;  %v4102_v23 = vpop.f32.mrb[22].mxu1 }
 0x262   : > { %v4103_v50 = vpop.f32.mrb[23].mxu1 }
 0x263   : > { %v6158_v39 = vadd.f32 %v4103_v50, %v4102_v23 }
 0x267   : > { %4622 = vmatmul.mubr.msk.bf16.vlgmr.msra.gmra.mrb[16].mxu0 %vm5392_vm6, %v6949_v28  ;;  %4001 = vmatmul.mubr.msk.bf16.gmra.mrb[128].mxu1 %vm5380_vm5, %v5932_v19  ;;  %v4105_v54 = vpop.f32.mrb[24].mxu1 }
 0x268   : > { %4654 = vmatpush3.bf16.msra.mxu0 %v6049_v41  ;;  %4625 = vmatprep.mubr.msk.bf16.mxu0 %vm5392_vm6, %v6950_v47  ;;  %v4106_v9 = vpop.f32.mrb[25].mxu1  ;;  %v5015_v41 = vld [vmem:[%s6797_s3] sm:$0xff]  }
 0x269   : > { %4655 = vmatprep.subr.bf16.mxu0 %v5008_v60  ;;  %2712 = vmatprep.mubr.bf16.mxu1 %v5924_v5  ;;  %v6174_v61 = vadd.f32 %v4106_v9, %v4105_v54  ;;  %v4108_v13 = vpop.f32.mrb[26].mxu1 }
 0x26a   : > { %v4109_v0 = vpop.f32.mrb[27].mxu1  ;;  %4701 = vmatprep.subr.bf16.mxu1 %v5015_v41 }
 0x26b   : > { %v6179_v17 = vadd.f32 %v4109_v0, %v4108_v13  ;;  %4702 = vmatpush3.bf16.msra.mxu1 %v5015_v41 }
 0x26c   : > { %4656 = vmatpush3.bf16.msra.mxu0 %v5008_v60 }
 0x26d   : > { %4657 = vmatprep.subr.bf16.mxu0 %v5009_v58 }
 0x26f   : > { %4626 = vmatmul.mubr.msk.bf16.gmra.mrb[20].mxu0 %vm5392_vm6, %v6951_v16  ;;  %4004 = vmatmul.mubr.msk.bf16.gmra.mrb[132].mxu1 %vm5380_vm5, %v5943_v25  ;;  %v4111_v5 = vpop.f32.mrb[28].mxu1  ;;  %v6953_v25 = vld [vmem:[#allocation39_spill] sm:$0xff] }
 0x270   : > { %4629 = vmatprep.mubr.msk.bf16.mxu0 %vm5392_vm6, %v6952_v38  ;;  %4658 = vmatpush3.bf16.msra.mxu0 %v5009_v58  ;;  %v4112_v19 = vpop.f32.mrb[29].mxu1  ;;  %v5016_v58 = vld [vmem:[%s6797_s3 + $0x8] sm:$0xff]  }
 0x271   : > { %4659 = vmatprep.subr.bf16.mxu0 %v5010_v42  ;;  %2720 = vmatprep.mubr.bf16.mxu1 %v5947_v34  ;;  %v6194_v22 = vadd.f32 %v4112_v19, %v4111_v5  ;;  %v4114_v1 = vpop.f32.mrb[30].mxu1  ;;  %v5013_v34 = vld [vmem:[%s6796_s2 + $0x230] sm:$0xff]  }
 0x272   : > { %v4115_v62 = vpop.f32.mrb[31].mxu1  ;;  %4703 = vmatprep.subr.bf16.mxu1 %v5016_v58 }
 0x273   : > { %v6199_v24 = vadd.f32 %v4115_v62, %v4114_v1  ;;  %4704 = vmatpush3.bf16.msra.mxu1 %v5016_v58 }
 0x274   : > { %4660 = vmatpush3.bf16.msra.mxu0 %v5010_v42 }
 0x275   : > { %4661 = vmatprep.subr.bf16.mxu0 %v5011_v30 }
 0x277   : > { %4630 = vmatmul.mubr.msk.bf16.gmra.mrb[24].mxu0 %vm5392_vm6, %v6953_v25  ;;  %4007 = vmatmul.mubr.msk.bf16.gmra.mrb[136].mxu1 %vm5380_vm5, %v5955_v37 }
 0x278   : > { %4633 = vmatprep.mubr.msk.bf16.mxu0 %vm5392_vm6, %v5805_v10  ;;  %4662 = vmatpush3.bf16.msra.mxu0 %v5011_v30  ;;  %v4117_v21 = vpop.f32.mrb[32].mxu1 }
 0x279   : > { %4663 = vmatprep.subr.bf16.mxu0 %v5012_v7  ;;  %2728 = vmatprep.mubr.bf16.mxu1 %v5032_v44  ;;  %v4118_v53 = vpop.f32.mrb[33].mxu1 }
 0x27a   : > { %v6214_v6 = vadd.f32 %v4118_v53, %v4117_v21  ;;  %v4120_v20 = vpop.f32.mrb[34].mxu1 }
 0x27b   : > { %v4121_v36 = vpop.f32.mrb[35].mxu1 }
 0x27c   : > { %4664 = vmatpush3.bf16.msra.mxu0 %v5012_v7  ;;  %v6219_v37 = vadd.f32 %v4121_v36, %v4120_v20 }
 0x27d   : > { %4665 = vmatprep.subr.bf16.mxu0 %v5013_v34 }
 0x27f   : > { %4634 = vmatmul.mubr.msk.bf16.gmra.mrb[28].mxu0 %vm5392_vm6, %v5817_v63  ;;  %2729 = vmatmul.mubr.bf16.gmra.mrb[140].mxu1 %v5032_v44 }
 0x280   : > { %4637 = vmatprep.mubr.msk.bf16.mxu0 %vm5392_vm6, %v5828_v12  ;;  %4666 = vmatpush3.bf16.msra.mxu0 %v5013_v34  ;;  %v4123_v52 = vpop.f32.mrb[36].mxu1 }
 0x281   : > { %4667 = vmatprep.subr.bf16.mxu0 %v5014_v3  ;;  %v4124_v56 = vpop.f32.mrb[37].mxu1 }
 0x282   : > { %v6228_v33 = vadd.f32 %v4124_v56, %v4123_v52  ;;  %v4126_v51 = vpop.f32.mrb[38].mxu1 }
 0x283   : > { %v4127_v43 = vpop.f32.mrb[39].mxu1 }
 0x284   : > { %4668 = vmatpush3.bf16.msra.mxu0 %v5014_v3  ;;  %v6230_v29 = vadd.f32 %v4127_v43, %v4126_v51 }
 0x287   : > { %4638 = vmatmul.mubr.msk.bf16.gmra.mrb[32].mxu0 %vm5392_vm6, %v5576_v35 }
 0x288   : > { %4641 = vmatprep.mubr.msk.bf16.mxu0 %vm5392_vm6, %v5579_v8 }
 0x28a   : > { %v4129_v15 = vpop.f32.mrb[40].mxu1 }
 0x28b   : > { %v4130_v49 = vpop.f32.mrb[41].mxu1 }
 0x28c   : > { %v6241_v2 = vadd.f32 %v4130_v49, %v4129_v15  ;;  %v4132_v26 = vpop.f32.mrb[42].mxu1 }
 0x28d   : > { %v4133_v55 = vpop.f32.mrb[43].mxu1 }
 0x28e   : > { %v6243_v32 = vadd.f32 %v4133_v55, %v4132_v26 }
 0x28f   : > { %4642 = vmatmul.mubr.msk.bf16.gmra.mrb[36].mxu0 %vm5392_vm6, %v5606_v59 }
 0x290   : > { %4645 = vmatprep.mubr.msk.bf16.mxu0 %vm5392_vm6, %v5737_v27 }
 0x292   : > { %v4135_v40 = vpop.f32.mrb[44].mxu1 }
 0x293   : > { %v4136_v57 = vpop.f32.mrb[45].mxu1 }
 0x294   : > { %v6251_v23 = vadd.f32 %v4136_v57, %v4135_v40  ;;  %v4138_v60 = vpop.f32.mrb[46].mxu1 }
 0x295   : > { %v4139_v50 = vpop.f32.mrb[47].mxu1 }
 0x296   : > { %v6253_v28 = vadd.f32 %v4139_v50, %v4138_v60 }
 0x297   : > { %4646 = vmatmul.mubr.msk.bf16.gmra.mrb[40].mxu0 %vm5392_vm6, %v5745_v48 }
 0x298   : > { %4649 = vmatprep.mubr.msk.bf16.mxu0 %vm5392_vm6, %v5854_v46 }
 0x29a   : > { %v4141_v54 = vpop.f32.mrb[48].mxu1 }
 0x29b   : > { %v4142_v9 = vpop.f32.mrb[49].mxu1 }
 0x29c   : > { %v6264_v13 = vadd.f32 %v4142_v9, %v4141_v54  ;;  %v4144_v42 = vpop.f32.mrb[50].mxu1 }
 0x29d   : > { %v4145_v0 = vpop.f32.mrb[51].mxu1 }
 0x29e   : > { %v6266_v30 = vadd.f32 %v4145_v0, %v4144_v42 }
 0x29f   : > { %4650 = vmatmul.mubr.msk.bf16.gmra.mrb[44].mxu0 %vm5392_vm6, %v5867_v18 }
 0x2a0   : > { %4669 = vmatprep.mubr.msk.bf16.mxu0 %vm5392_vm6, %v6950_v47  ;;  %v5017_v47 = vld [vmem:[%s6797_s3 + $0x10] sm:$0xff]  }
 0x2a1   : > { %4705 = vmatprep.subr.bf16.mxu1 %v5017_v47 }
 0x2a2   : > { %v4147_v5 = vpop.f32.mrb[52].mxu1  ;;  %4706 = vmatpush3.bf16.msra.mxu1 %v5017_v47 }
 0x2a3   : > { %v4148_v19 = vpop.f32.mrb[53].mxu1 }
 0x2a4   : > { %v6274_v1 = vadd.f32 %v4148_v19, %v4147_v5  ;;  %v4150_v7 = vpop.f32.mrb[54].mxu1 }
 0x2a5   : > { %v4151_v62 = vpop.f32.mrb[55].mxu1 }
 0x2a6   : > { %v6276_v34 = vadd.f32 %v4151_v62, %v4150_v7 }
 0x2a7   : > { %4670 = vmatmul.mubr.msk.bf16.vlgmr.msra.gmra.mrb[16].mxu0 %vm5392_vm6, %v6951_v16 }
 0x2a8   : > { %4673 = vmatprep.mubr.msk.bf16.mxu0 %vm5392_vm6, %v6952_v38 }
 0x2aa   : > { %v4153_v21 = vpop.f32.mrb[56].mxu1 }
 0x2ab   : > { %v4154_v53 = vpop.f32.mrb[57].mxu1 }
 0x2ac   : > { %v6287_v20 = vadd.f32 %v4154_v53, %v4153_v21  ;;  %v4156_v3 = vpop.f32.mrb[58].mxu1 }
 0x2ad   : > { %v4157_v36 = vpop.f32.mrb[59].mxu1 }
 0x2ae   : > { %v6289_v52 = vadd.f32 %v4157_v36, %v4156_v3 }
 0x2af   : > { %4674 = vmatmul.mubr.msk.bf16.gmra.mrb[20].mxu0 %vm5392_vm6, %v6953_v25 }
 0x2b0   : > { %4677 = vmatprep.mubr.msk.bf16.mxu0 %vm5392_vm6, %v5805_v10  ;;  %v5018_v10 = vld [vmem:[%s6797_s3 + $0x18] sm:$0xff]  }
 0x2b1   : > { %4707 = vmatprep.subr.bf16.mxu1 %v5018_v10 }
 0x2b2   : > { %v4159_v16 = vpop.f32.mrb[60].mxu1  ;;  %4708 = vmatpush3.bf16.msra.mxu1 %v5018_v10 }
 0x2b3   : > { %v4160_v38 = vpop.f32.mrb[61].mxu1 }
 0x2b4   : > { %v6297_v56 = vadd.f32 %v4160_v38, %v4159_v16  ;;  %v4162_v51 = vpop.f32.mrb[62].mxu1 }
 0x2b5   : > { %v4163_v43 = vpop.f32.mrb[63].mxu1 }
 0x2b6   : > { %v6299_v41 = vadd.f32 %v4163_v43, %v4162_v51 }
 0x2b7   : > { %4678 = vmatmul.mubr.msk.bf16.gmra.mrb[24].mxu0 %vm5392_vm6, %v5817_v63 }
 0x2b8   : > { %4681 = vmatprep.mubr.msk.bf16.mxu0 %vm5392_vm6, %v5828_v12 }
 0x2ba   : > { %v4229_v25 = vpop.f32.mrb[48].mxu0  ;;  %v4165_v26 = vpop.f32.mrb[64].mxu1 }
 0x2bb   : > { %v4230_v15 = vpop.f32.mrb[49].mxu0  ;;  %v4166_v40 = vpop.f32.mrb[65].mxu1 }
 0x2bc   : > { %v4231_v49 = vadd.f32 %v4230_v15, %v4229_v25  ;;  %v4232_v55 = vpop.f32.mrb[50].mxu0  ;;  %v6313_v63 = vadd.f32 %v4166_v40, %v4165_v26  ;;  %v4168_v12 = vpop.f32.mrb[66].mxu1 }
 0x2bd   : > { %v4233_v57 = vpop.f32.mrb[51].mxu0  ;;  %v4169_v58 = vpop.f32.mrb[67].mxu1 }
 0x2be   : > { %v6311_v60 = vadd.f32 %v4231_v49, %v6141_v31  ;;  %v4234_v50 = vadd.f32 %v4233_v57, %v4232_v55  ;;  %v6321_v9 = vadd.f32 %v4169_v58, %v4168_v12 }
 0x2bf   : > { %4682 = vmatmul.mubr.msk.bf16.gmra.mrb[28].mxu0 %vm5392_vm6, %v5576_v35 }
 0x2c0   : > { %v6319_v54 = vadd.f32 %v4234_v50, %v6143_v11  ;;  %4685 = vmatprep.mubr.msk.bf16.mxu0 %vm5392_vm6, %v5579_v8 }
 0x2c2   : > { %v4235_v31 = vpop.f32.mrb[52].mxu0  ;;  %v4171_v5 = vpop.f32.mrb[68].mxu1 }
 0x2c3   : > { %v4236_v42 = vpop.f32.mrb[53].mxu0  ;;  %v4172_v7 = vpop.f32.mrb[69].mxu1 }
 0x2c4   : > { %v4237_v0 = vadd.f32 %v4236_v42, %v4235_v31  ;;  %v4238_v19 = vpop.f32.mrb[54].mxu0  ;;  %v6329_v35 = vadd.f32 %v4172_v7, %v4171_v5  ;;  %v4174_v21 = vpop.f32.mrb[70].mxu1  ;;  %v5021_v7 = vld [vmem:[%s6797_s3 + $0x30] sm:$0xff]  }
 0x2c5   : > { %v4239_v62 = vpop.f32.mrb[55].mxu0  ;;  %v4175_v53 = vpop.f32.mrb[71].mxu1 }
 0x2c6   : > { %v6327_v47 = vadd.f32 %v4237_v0, %v6153_v14  ;;  %v4240_v11 = vadd.f32 %v4239_v62, %v4238_v19  ;;  %v6337_v3 = vadd.f32 %v4175_v53, %v4174_v21  ;;  %v5019_v14 = vld [vmem:[%s6797_s3 + $0x20] sm:$0xff]  }
 0x2c7   : > { %4686 = vmatmul.mubr.msk.bf16.gmra.mrb[32].mxu0 %vm5392_vm6, %v5606_v59  ;;  %4709 = vmatprep.subr.bf16.mxu1 %v5019_v14 }
 0x2c8   : > { %v6335_v8 = vadd.f32 %v4240_v11, %v6158_v39  ;;  %4689 = vmatprep.mubr.msk.bf16.mxu0 %vm5392_vm6, %v5737_v27  ;;  %4710 = vmatpush3.bf16.msra.mxu1 %v5019_v14 }
 0x2ca   : > { %v4241_v36 = vpop.f32.mrb[56].mxu0  ;;  %v4177_v51 = vpop.f32.mrb[72].mxu1 }
 0x2cb   : > { %v4242_v16 = vpop.f32.mrb[57].mxu0  ;;  %v4178_v43 = vpop.f32.mrb[73].mxu1 }
 0x2cc   : > { %v4243_v38 = vadd.f32 %v4242_v16, %v4241_v36  ;;  %v4244_v59 = vpop.f32.mrb[58].mxu0  ;;  %v6348_v25 = vadd.f32 %v4178_v43, %v4177_v51  ;;  %v4180_v27 = vpop.f32.mrb[74].mxu1 }
 0x2cd   : > { %v4245_v39 = vpop.f32.mrb[59].mxu0  ;;  %v4181_v49 = vpop.f32.mrb[75].mxu1 }
 0x2ce   : > { %v6346_v10 = vadd.f32 %v4243_v38, %v6174_v61  ;;  %v4246_v15 = vadd.f32 %v4245_v39, %v4244_v59  ;;  %v6356_v55 = vadd.f32 %v4181_v49, %v4180_v27 }
 0x2cf   : > { %4690 = vmatmul.mubr.msk.bf16.gmra.mrb[36].mxu0 %vm5392_vm6, %v5745_v48 }
 0x2d0   : > { %v6354_v26 = vadd.f32 %v4246_v15, %v6179_v17  ;;  %4693 = vmatprep.mubr.msk.bf16.mxu0 %vm5392_vm6, %v5854_v46 }
 0x2d2   : > { %v4247_v61 = vpop.f32.mrb[60].mxu0  ;;  %v4183_v50 = vpop.f32.mrb[76].mxu1 }
 0x2d3   : > { %v4248_v40 = vpop.f32.mrb[61].mxu0  ;;  %v4184_v58 = vpop.f32.mrb[77].mxu1 }
 0x2d4   : > { %v4249_v57 = vadd.f32 %v4248_v40, %v4247_v61  ;;  %v4250_v12 = vpop.f32.mrb[62].mxu0  ;;  %v6364_v48 = vadd.f32 %v4184_v58, %v4183_v50  ;;  %v4186_v0 = vpop.f32.mrb[78].mxu1 }
 0x2d5   : > { %v4251_v31 = vpop.f32.mrb[63].mxu0  ;;  %v4187_v5 = vpop.f32.mrb[79].mxu1 }
 0x2d6   : > { %v6362_v42 = vadd.f32 %v4249_v57, %v6194_v22  ;;  %v4252_v17 = vadd.f32 %v4251_v31, %v4250_v12  ;;  %v6372_v19 = vadd.f32 %v4187_v5, %v4186_v0  ;;  %v5020_v22 = vld [vmem:[%s6797_s3 + $0x28] sm:$0xff]  }
 0x2d7   : > { %4694 = vmatmul.mubr.msk.bf16.gmra.mrb[40].mxu0 %vm5392_vm6, %v5867_v18  ;;  %4711 = vmatprep.subr.bf16.mxu1 %v5020_v22 }
 0x2d8   : > { %v6370_v46 = vadd.f32 %v4252_v17, %v6199_v24  ;;  %4697 = vmatprep.mubr.msk.bf16.mxu0 %vm5392_vm6, %v5876_v4  ;;  %4712 = vmatpush3.bf16.msra.mxu1 %v5020_v22 }
 0x2d9   : > { %4713 = vmatprep.subr.bf16.mxu1 %v5021_v7 }
 0x2da   : > { %v4253_v62 = vpop.f32.mrb[64].mxu0  ;;  %v4365_v21 = vpop.f32.mrb[80].mxu1 }
 0x2db   : > { %v4254_v18 = vpop.f32.mrb[65].mxu0  ;;  %v4366_v53 = vpop.f32.mrb[81].mxu1 }
 0x2dc   : > { %v4255_v24 = vadd.f32 %v4254_v18, %v4253_v62  ;;  %v4256_v11 = vpop.f32.mrb[66].mxu0  ;;  %v4367_v16 = vadd.f32 %v4366_v53, %v4365_v21  ;;  %v4368_v38 = vpop.f32.mrb[82].mxu1  ;;  %4714 = vmatpush3.bf16.msra.mxu1 %v5021_v7 }
 0x2dd   : > { %v4257_v4 = vpop.f32.mrb[67].mxu0  ;;  %v4369_v51 = vpop.f32.mrb[83].mxu1  ;;  %4715 = vmatprep.subr.bf16.mxu1 %v5022_v45 }
 0x2de   : > { %v6387_v14 = vadd.f32 %v4255_v24, %v6214_v6  ;;  %v4258_v36 = vadd.f32 %v4257_v4, %v4256_v11  ;;  %v4370_v43 = vadd.f32 %v4369_v51, %v4368_v38  ;;  %v6394_v39 = vadd.f32 %v6311_v60, %v4367_v16 }
 0x2df   : > { %4698 = vmatmul.mubr.bf16.gmra.mrb[44].mxu0 %v5032_v44 }
 0x2e0   : > { %v6391_v59 = vadd.f32 %v4258_v36, %v6219_v37  ;;  %v6397_v27 = vadd.f32 %v6319_v54, %v4370_v43  ;;  %4716 = vmatpush3.bf16.msra.mxu1 %v5022_v45 }
 0x2e2   : > { %v4259_v15 = vpop.f32.mrb[68].mxu0  ;;  %v4371_v40 = vpop.f32.mrb[84].mxu1 }
 0x2e3   : > { %v4260_v6 = vpop.f32.mrb[69].mxu0  ;;  %v4372_v44 = vpop.f32.mrb[85].mxu1 }
 0x2e4   : > { %v4261_v49 = vadd.f32 %v4260_v6, %v4259_v15  ;;  %v4262_v61 = vpop.f32.mrb[70].mxu0  ;;  %v4373_v12 = vadd.f32 %v4372_v44, %v4371_v40  ;;  %v4374_v58 = vpop.f32.mrb[86].mxu1 }
 0x2e5   : > { %v4263_v57 = vpop.f32.mrb[71].mxu0  ;;  %v4375_v31 = vpop.f32.mrb[87].mxu1 }
 0x2e6   : > { %v6400_v50 = vadd.f32 %v4261_v49, %v6228_v33  ;;  %v4264_v37 = vadd.f32 %v4263_v57, %v4262_v61  ;;  %v4376_v17 = vadd.f32 %v4375_v31, %v4374_v58  ;;  %v6406_v54 = vadd.f32 %v6327_v47, %v4373_v12 }
 0x2e8   : > { %v6403_v60 = vadd.f32 %v4264_v37, %v6230_v29  ;;  %v6409_v5 = vadd.f32 %v6335_v8, %v4376_v17 }
 0x2ea   : > { %v4265_v0 = vpop.f32.mrb[72].mxu0  ;;  %v4377_v33 = vpop.f32.mrb[88].mxu1 }
 0x2eb   : > { %v4266_v22 = vpop.f32.mrb[73].mxu0  ;;  %v4378_v24 = vpop.f32.mrb[89].mxu1 }
 0x2ec   : > { %v4267_v7 = vadd.f32 %v4266_v22, %v4265_v0  ;;  %v4268_v62 = vpop.f32.mrb[74].mxu0  ;;  %v4379_v29 = vadd.f32 %v4378_v24, %v4377_v33  ;;  %v4380_v45 = vpop.f32.mrb[90].mxu1 }
 0x2ed   : > { %v4269_v18 = vpop.f32.mrb[75].mxu0  ;;  %v4381_v4 = vpop.f32.mrb[91].mxu1 }
 0x2ee   : > { %v6412_v11 = vadd.f32 %v4267_v7, %v6241_v2  ;;  %v4270_v21 = vadd.f32 %v4269_v18, %v4268_v62  ;;  %v4382_v53 = vadd.f32 %v4381_v4, %v4380_v45  ;;  %v6418_v8 = vadd.f32 %v6346_v10, %v4379_v29 }
 0x2f0   : > { %v6415_v47 = vadd.f32 %v4270_v21, %v6243_v32  ;;  %v6421_v16 = vadd.f32 %v6354_v26, %v4382_v53 }
 0x2f2   : > { %v4271_v36 = vpop.f32.mrb[76].mxu0  ;;  %v4383_v2 = vpop.f32.mrb[92].mxu1 }
 0x2f3   : > { %v4272_v38 = vpop.f32.mrb[77].mxu0  ;;  %v4384_v6 = vpop.f32.mrb[93].mxu1 }
 0x2f4   : > { %v4273_v51 = vadd.f32 %v4272_v38, %v4271_v36  ;;  %v4274_v43 = vpop.f32.mrb[78].mxu0  ;;  %v4385_v32 = vadd.f32 %v4384_v6, %v4383_v2  ;;  %v4386_v40 = vpop.f32.mrb[94].mxu1 }
 0x2f5   : > { %v4275_v15 = vpop.f32.mrb[79].mxu0  ;;  %v4387_v57 = vpop.f32.mrb[95].mxu1 }
 0x2f6   : > { %v6424_v49 = vadd.f32 %v4273_v51, %v6251_v23  ;;  %v4276_v61 = vadd.f32 %v4275_v15, %v4274_v43  ;;  %v4388_v44 = vadd.f32 %v4387_v57, %v4386_v40  ;;  %v6430_v26 = vadd.f32 %v6362_v42, %v4385_v32 }
 0x2f8   : > { %v6427_v10 = vadd.f32 %v4276_v61, %v6253_v28  ;;  %v6433_v12 = vadd.f32 %v6370_v46, %v4388_v44 }
 0x2fa   : > { %v4277_v37 = vpop.f32.mrb[80].mxu0  ;;  %v4389_v23 = vpop.f32.mrb[96].mxu1 }
 0x2fb   : > { %v4278_v58 = vpop.f32.mrb[81].mxu0  ;;  %v4390_v22 = vpop.f32.mrb[97].mxu1 }
 0x2fc   : > { %v4279_v31 = vadd.f32 %v4278_v58, %v4277_v37  ;;  %v4280_v17 = vpop.f32.mrb[82].mxu0  ;;  %v4391_v28 = vadd.f32 %v4390_v22, %v4389_v23  ;;  %v4392_v33 = vpop.f32.mrb[98].mxu1 }
 0x2fd   : > { %v4281_v0 = vpop.f32.mrb[83].mxu0  ;;  %v4393_v18 = vpop.f32.mrb[99].mxu1 }
 0x2fe   : > { %v6436_v7 = vadd.f32 %v4279_v31, %v6264_v13  ;;  %v4282_v62 = vadd.f32 %v4281_v0, %v4280_v17  ;;  %v4394_v24 = vadd.f32 %v4393_v18, %v4392_v33  ;;  %v6442_v46 = vadd.f32 %v6387_v14, %v4391_v28 }
 0x300   : > { %v6439_v42 = vadd.f32 %v4282_v62, %v6266_v30  ;;  %v6445_v29 = vadd.f32 %v6391_v59, %v4394_v24 }
 0x302   : > { %v4283_v21 = vpop.f32.mrb[84].mxu0  ;;  %v4395_v13 = vpop.f32.mrb[100].mxu1 }
 0x303   : > { %v4284_v45 = vpop.f32.mrb[85].mxu0  ;;  %v4396_v38 = vpop.f32.mrb[101].mxu1 }
 0x304   : > { %v4285_v4 = vadd.f32 %v4284_v45, %v4283_v21  ;;  %v4286_v53 = vpop.f32.mrb[86].mxu0  ;;  %v4397_v30 = vadd.f32 %v4396_v38, %v4395_v13  ;;  %v4398_v2 = vpop.f32.mrb[102].mxu1 }
 0x305   : > { %v4287_v36 = vpop.f32.mrb[87].mxu0  ;;  %v4399_v15 = vpop.f32.mrb[103].mxu1 }
 0x306   : > { %v6448_v51 = vadd.f32 %v4285_v4, %v6274_v1  ;;  %v4288_v43 = vadd.f32 %v4287_v36, %v4286_v53  ;;  %v4400_v6 = vadd.f32 %v4399_v15, %v4398_v2  ;;  %v6454_v59 = vadd.f32 %v6400_v50, %v4397_v30 }
 0x308   : > { %v6451_v14 = vadd.f32 %v4288_v43, %v6276_v34  ;;  %v6457_v32 = vadd.f32 %v6403_v60, %v4400_v6 }
 0x30a   : > { %v4289_v61 = vpop.f32.mrb[88].mxu0  ;;  %v4401_v1 = vpop.f32.mrb[104].mxu1 }
 0x30b   : > { %v4290_v40 = vpop.f32.mrb[89].mxu0  ;;  %v4402_v58 = vpop.f32.mrb[105].mxu1 }
 0x30c   : > { %v4291_v57 = vadd.f32 %v4290_v40, %v4289_v61  ;;  %v4292_v44 = vpop.f32.mrb[90].mxu0  ;;  %v4403_v34 = vadd.f32 %v4402_v58, %v4401_v1  ;;  %v4404_v23 = vpop.f32.mrb[106].mxu1 }
 0x30d   : > { %v4293_v37 = vpop.f32.mrb[91].mxu0  ;;  %v4405_v0 = vpop.f32.mrb[107].mxu1 }
 0x30e   : > { %v6460_v31 = vadd.f32 %v4291_v57, %v6287_v20  ;;  %v4294_v17 = vadd.f32 %v4293_v37, %v4292_v44  ;;  %v4406_v22 = vadd.f32 %v4405_v0, %v4404_v23  ;;  %v6466_v60 = vadd.f32 %v6412_v11, %v4403_v34 }
 0x310   : > { %v6463_v50 = vadd.f32 %v4294_v17, %v6289_v52  ;;  %v6469_v28 = vadd.f32 %v6415_v47, %v4406_v22 }
 0x312   : > { %v4295_v62 = vpop.f32.mrb[92].mxu0  ;;  %v4407_v20 = vpop.f32.mrb[108].mxu1 }
 0x313   : > { %v4296_v33 = vpop.f32.mrb[93].mxu0  ;;  %v4408_v45 = vpop.f32.mrb[109].mxu1 }
 0x314   : > { %v4297_v18 = vadd.f32 %v4296_v33, %v4295_v62  ;;  %v4298_v24 = vpop.f32.mrb[94].mxu0  ;;  %v4409_v52 = vadd.f32 %v4408_v45, %v4407_v20  ;;  %v4410_v13 = vpop.f32.mrb[110].mxu1 }
 0x315   : > { %v4299_v21 = vpop.f32.mrb[95].mxu0  ;;  %v4411_v36 = vpop.f32.mrb[111].mxu1 }
 0x316   : > { %v6472_v4 = vadd.f32 %v4297_v18, %v6297_v56  ;;  %v4300_v53 = vadd.f32 %v4299_v21, %v4298_v24  ;;  %v4412_v38 = vadd.f32 %v4411_v36, %v4410_v13  ;;  %v6478_v47 = vadd.f32 %v6424_v49, %v4409_v52 }
 0x318   : > { %v6475_v11 = vadd.f32 %v4300_v53, %v6299_v41  ;;  %v6481_v30 = vadd.f32 %v6427_v10, %v4412_v38 }
 0x31a   : > { %v4301_v43 = vpop.f32.mrb[96].mxu0  ;;  %v4413_v56 = vpop.f32.mrb[112].mxu1 }
 0x31b   : > { %v4302_v2 = vpop.f32.mrb[97].mxu0  ;;  %v4414_v40 = vpop.f32.mrb[113].mxu1 }
 0x31c   : > { %v4303_v15 = vadd.f32 %v4302_v2, %v4301_v43  ;;  %v4304_v6 = vpop.f32.mrb[98].mxu0  ;;  %v4415_v41 = vadd.f32 %v4414_v40, %v4413_v56  ;;  %v4416_v1 = vpop.f32.mrb[114].mxu1 }
 0x31d   : > { %v4305_v61 = vpop.f32.mrb[99].mxu0  ;;  %v4417_v37 = vpop.f32.mrb[115].mxu1 }
 0x31e   : > { %v6484_v57 = vadd.f32 %v4303_v15, %v6313_v63  ;;  %v4306_v44 = vadd.f32 %v4305_v61, %v4304_v6  ;;  %v4418_v58 = vadd.f32 %v4417_v37, %v4416_v1  ;;  %v6488_v17 = vadd.f32 %v6436_v7, %v4415_v41 }
 0x320   : > { %v4846_v49 = vadd.f32 %v4306_v44, %v6321_v9  ;;  %v6491_v34 = vadd.f32 %v6439_v42, %v4418_v58 }
 0x322   : > { %v4307_v10 = vpop.f32.mrb[100].mxu0  ;;  %v4419_v62 = vpop.f32.mrb[116].mxu1 }
 0x323   : > { %v4308_v23 = vpop.f32.mrb[101].mxu0  ;;  %v4420_v33 = vpop.f32.mrb[117].mxu1 }
 0x324   : > { %v4309_v0 = vadd.f32 %v4308_v23, %v4307_v10  ;;  %v4310_v22 = vpop.f32.mrb[102].mxu0  ;;  %v4421_v20 = vadd.f32 %v4420_v33, %v4419_v62  ;;  %v4422_v21 = vpop.f32.mrb[118].mxu1 }
 0x325   : > { %v4311_v63 = vpop.f32.mrb[103].mxu0  ;;  %v4423_v9 = vpop.f32.mrb[119].mxu1 }
 0x326   : > { %v4837_v18 = vadd.f32 %v4309_v0, %v6329_v35  ;;  %v4312_v24 = vadd.f32 %v4311_v63, %v4310_v22  ;;  %v4424_v7 = vadd.f32 %v4423_v9, %v4422_v21  ;;  %v6496_v53 = vadd.f32 %v6448_v51, %v4421_v20 }
 0x328   : > { %v4843_v45 = vadd.f32 %v4312_v24, %v6337_v3  ;;  %v6499_v52 = vadd.f32 %v6451_v14, %v4424_v7 }
 0x32a   : > { %v4313_v42 = vpop.f32.mrb[104].mxu0  ;;  %v4425_v43 = vpop.f32.mrb[120].mxu1 }
 0x32b   : > { %v4314_v13 = vpop.f32.mrb[105].mxu0  ;;  %v4426_v35 = vpop.f32.mrb[121].mxu1 }
 0x32c   : > { %v4315_v36 = vadd.f32 %v4314_v13, %v4313_v42  ;;  %v4316_v38 = vpop.f32.mrb[106].mxu0  ;;  %v4427_v56 = vadd.f32 %v4426_v35, %v4425_v43  ;;  %v4428_v61 = vpop.f32.mrb[122].mxu1 }
 0x32d   : > { %v4317_v2 = vpop.f32.mrb[107].mxu0  ;;  %v4429_v3 = vpop.f32.mrb[123].mxu1 }
 0x32e   : > { %v4852_v15 = vadd.f32 %v4315_v36, %v6348_v25  ;;  %v4318_v6 = vadd.f32 %v4317_v2, %v4316_v38  ;;  %v4430_v51 = vadd.f32 %v4429_v3, %v4428_v61  ;;  %v6504_v44 = vadd.f32 %v6460_v31, %v4427_v56 }
 0x330   : > { %v4858_v40 = vadd.f32 %v4318_v6, %v6356_v55  ;;  %v6507_v41 = vadd.f32 %v6463_v50, %v4430_v51 }
 0x332   : > { %v4319_v14 = vpop.f32.mrb[108].mxu0  ;;  %v4431_v10 = vpop.f32.mrb[124].mxu1 }
 0x333   : > { %v4320_v1 = vpop.f32.mrb[109].mxu0  ;;  %v4432_v25 = vpop.f32.mrb[125].mxu1 }
 0x334   : > { %v4321_v37 = vadd.f32 %v4320_v1, %v4319_v14  ;;  %v4322_v58 = vpop.f32.mrb[110].mxu0  ;;  %v4433_v62 = vadd.f32 %v4432_v25, %v4431_v10  ;;  %v4434_v63 = vpop.f32.mrb[126].mxu1 }
 0x335   : > { %v4323_v23 = vpop.f32.mrb[111].mxu0  ;;  %v4435_v55 = vpop.f32.mrb[127].mxu1 }
 0x336   : > { %v4849_v0 = vadd.f32 %v4321_v37, %v6364_v48  ;;  %v4324_v22 = vadd.f32 %v4323_v23, %v4322_v58  ;;  %v4436_v31 = vadd.f32 %v4435_v55, %v4434_v63  ;;  %v6512_v24 = vadd.f32 %v6472_v4, %v4433_v62  ;;  %v6537_v63 = vld [vmem:[%s6800_s6] ss:$0 sm:$0xff] }
 0x337   : > { %v6543_v55 = vld [vmem:[%s6801_s7] ss:$0 sm:$0xff] }
 0x338   : > { %v4855_v33 = vadd.f32 %v4324_v22, %v6372_v19  ;;  %v6515_v50 = vadd.f32 %v6475_v11, %v4436_v31 }
 0x33a   : > { %v4437_v20 = vpop.f32.mrb[128].mxu1 }
 0x33b   : > { %v4438_v21 = vpop.f32.mrb[129].mxu1 }
 0x33c   : > { %v4439_v9 = vadd.f32 %v4438_v21, %v4437_v20  ;;  %v4440_v7 = vpop.f32.mrb[130].mxu1 }
 0x33d   : > { %v4441_v42 = vpop.f32.mrb[131].mxu1 }
 0x33e   : > { %v4442_v13 = vadd.f32 %v4441_v42, %v4440_v7  ;;  %v6518_v48 = vadd.f32 %v6484_v57, %v4439_v9 }
 0x340   : > { %v6520_v36 = vadd.f32 %v4846_v49, %v4442_v13 }
 0x342   : > { %v4443_v38 = vpop.f32.mrb[132].mxu1 }
 0x343   : > { %v4444_v19 = vpop.f32.mrb[133].mxu1 }
 0x344   : > { %v4445_v43 = vadd.f32 %v4444_v19, %v4443_v38  ;;  %v4446_v2 = vpop.f32.mrb[134].mxu1 }
 0x345   : > { %v4447_v4 = vpop.f32.mrb[135].mxu1 }
 0x346   : > { %v4448_v35 = vadd.f32 %v4447_v4, %v4446_v2  ;;  %v6522_v6 = vadd.f32 %v4837_v18, %v4445_v43 }
 0x348   : > { %v6524_v11 = vadd.f32 %v4843_v45, %v4448_v35 }
 0x34a   : > { %v4449_v56 = vpop.f32.mrb[136].mxu1 }
 0x34b   : > { %v4450_v61 = vpop.f32.mrb[137].mxu1 }
 0x34c   : > { %v4451_v3 = vadd.f32 %v4450_v61, %v4449_v56  ;;  %v4452_v51 = vpop.f32.mrb[138].mxu1 }
 0x34d   : > { %v4453_v14 = vpop.f32.mrb[139].mxu1 }
 0x34e   : > { %v4454_v1 = vadd.f32 %v4453_v14, %v4452_v51  ;;  %v6526_v57 = vadd.f32 %v4852_v15, %v4451_v3 }
 0x350   : > { %v6528_v49 = vadd.f32 %v4858_v40, %v4454_v1 }
 0x352   : > { %v4455_v37 = vpop.f32.mrb[140].mxu1 }
 0x353   : > { %v4456_v58 = vpop.f32.mrb[141].mxu1 }
 0x354   : > { %v4457_v10 = vadd.f32 %v4456_v58, %v4455_v37  ;;  %v4458_v23 = vpop.f32.mrb[142].mxu1 }
 0x355   : > { %v4459_v25 = vpop.f32.mrb[143].mxu1 }
 0x356   : > { %v4460_v22 = vadd.f32 %v4459_v25, %v4458_v23  ;;  %v6530_v18 = vadd.f32 %v4849_v0, %v4457_v10 }
 0x358   : > { %v6532_v45 = vadd.f32 %v4855_v33, %v4460_v22 }
 0x37a   : > { %v4671_v62 = vpop.f32.mrb[16].mxu0 }
 0x37b   : > { %v4767_v15 = vadd.f32 %v6406_v54, %v4671_v62  ;;  %v2771_v40 = vpop.f32.mrb[17].mxu0 }
 0x37c   : > { %v4770_v31 = vadd.f32 %v6394_v39, %v2771_v40  ;;  %v4672_v0 = vpop.f32.mrb[18].mxu0 }
 0x37d   : > { %v2939_v33 = vmul.f32 %v4767_v15, %v6537_v63  ;;  %v4773_v20 = vadd.f32 %v6409_v5, %v4672_v0  ;;  %v2774_v21 = vpop.f32.mrb[19].mxu0 }
 0x37e   : > { %v2937_v9 = vmul.f32 %v4770_v31, %v6537_v63  ;;  %v4776_v7 = vadd.f32 %v6397_v27, %v2774_v21 }
 0x37f   : > { %v2978_v54 = vadd.f32 %v6543_v55, %v2939_v33  ;;  %v2940_v42 = vmul.f32 %v4773_v20, %v6537_v63 }
 0x380   : > { %v2976_v13 = vadd.f32 %v6543_v55, %v2937_v9  ;;  %v2938_v38 = vmul.f32 %v4776_v7, %v6537_v63 }
 0x381   : > { %v2979_v39 = vadd.f32 %v6543_v55, %v2940_v42  ;;  %v3010_v2 = vmax.f32 %v2978_v54, 0.0 }
 0x382   : > { %v2977_v19 = vadd.f32 %v6543_v55, %v2938_v38  ;;  %v4675_v43 = vpop.f32.mrb[20].mxu0  ;;  %v3008_v56 = vmax.f32 %v2976_v13, 0.0 }
 0x383   : > { %v3011_v5 = vmax.f32 %v2979_v39, 0.0  ;;  %v4779_v4 = vadd.f32 %v6430_v26, %v4675_v43  ;;  %v2787_v35 = vpop.f32.mrb[21].mxu0 }
 0x384   : > { %v3009_v27 = vmax.f32 %v2977_v19, 0.0  ;;  %v4782_v61 = vadd.f32 %v6418_v8, %v2787_v35  ;;  %v4676_v3 = vpop.f32.mrb[22].mxu0 }
 0x385   : > { %v3041_v51 = vpack.c.bf16 %v3011_v5, %v3010_v2  ;;  %v2943_v14 = vmul.f32 %v4779_v4, %v6537_v63  ;;  %v4785_v1 = vadd.f32 %v6433_v12, %v4676_v3  ;;  %v2790_v37 = vpop.f32.mrb[23].mxu0 }
 0x386   : > { %v2941_v58 = vmul.f32 %v4782_v61, %v6537_v63  ;;  %v4788_v10 = vadd.f32 %v6421_v16, %v2790_v37  ;;  %v3040_v23 = vpack.c.bf16 %v3009_v27, %v3008_v56 }
 0x387   : > { %v2982_v25 = vadd.f32 %v6543_v55, %v2943_v14  ;;  %v2944_v26 = vmul.f32 %v4785_v1, %v6537_v63 }
 0x388   : > { %v2980_v22 = vadd.f32 %v6543_v55, %v2941_v58  ;;  %v2942_v8 = vmul.f32 %v4788_v10, %v6537_v63  ;;  %4717 = vmatprep.mubr.bf16.mxu1 %v3040_v23 }
 0x389   : > { %v2983_v62 = vadd.f32 %v6543_v55, %v2944_v26  ;;  %4718 = vmatmul.mubr.bf16.vlgmr.msra.gmra.mrb[144].mxu1 %v3041_v51  ;;  %v3014_v40 = vmax.f32 %v2982_v25, 0.0 }
 0x38a   : > { %v2981_v12 = vadd.f32 %v6543_v55, %v2942_v8  ;;  %v4679_v15 = vpop.f32.mrb[24].mxu0  ;;  %v3012_v33 = vmax.f32 %v2980_v22, 0.0 }
 0x38b   : > { %v3015_v31 = vmax.f32 %v2983_v62, 0.0  ;;  %v4791_v16 = vadd.f32 %v6454_v59, %v4679_v15  ;;  %v2803_v0 = vpop.f32.mrb[25].mxu0 }
 0x38c   : > { %v3013_v20 = vmax.f32 %v2981_v12, 0.0  ;;  %v4794_v21 = vadd.f32 %v6442_v46, %v2803_v0  ;;  %v4680_v9 = vpop.f32.mrb[26].mxu0 }
 0x38d   : > { %v2947_v7 = vmul.f32 %v4791_v16, %v6537_v63  ;;  %v4797_v54 = vadd.f32 %v6457_v32, %v4680_v9  ;;  %v2806_v42 = vpop.f32.mrb[27].mxu0  ;;  %v3043_v13 = vpack.c.bf16 %v3015_v31, %v3014_v40 }
 0x38e   : > { %v2945_v38 = vmul.f32 %v4794_v21, %v6537_v63  ;;  %v4800_v39 = vadd.f32 %v6445_v29, %v2806_v42  ;;  %v3042_v19 = vpack.c.bf16 %v3013_v20, %v3012_v33 }
 0x38f   : > { %v2986_v43 = vadd.f32 %v6543_v55, %v2947_v7  ;;  %v2948_v59 = vmul.f32 %v4797_v54, %v6537_v63 }
 0x390   : > { %v2984_v2 = vadd.f32 %v6543_v55, %v2945_v38  ;;  %v2946_v46 = vmul.f32 %v4800_v39, %v6537_v63  ;;  %4721 = vmatprep.mubr.bf16.mxu1 %v3042_v19 }
 0x391   : > { %v2987_v5 = vadd.f32 %v6543_v55, %v2948_v59  ;;  %4722 = vmatmul.mubr.bf16.gmra.mrb[148].mxu1 %v3043_v13  ;;  %v3018_v35 = vmax.f32 %v2986_v43, 0.0 }
 0x392   : > { %v2985_v32 = vadd.f32 %v6543_v55, %v2946_v46  ;;  %v4683_v4 = vpop.f32.mrb[28].mxu0  ;;  %v3016_v61 = vmax.f32 %v2984_v2, 0.0 }
 0x393   : > { %v3019_v56 = vmax.f32 %v2987_v5, 0.0  ;;  %v4803_v29 = vadd.f32 %v6478_v47, %v4683_v4  ;;  %v2819_v27 = vpop.f32.mrb[29].mxu0 }
 0x394   : > { %v3017_v3 = vmax.f32 %v2985_v32, 0.0  ;;  %v4806_v51 = vadd.f32 %v6466_v60, %v2819_v27  ;;  %v4684_v14 = vpop.f32.mrb[30].mxu0 }
 0x395   : > { %v2951_v1 = vmul.f32 %v4803_v29, %v6537_v63  ;;  %v4809_v37 = vadd.f32 %v6481_v30, %v4684_v14  ;;  %v2822_v58 = vpop.f32.mrb[31].mxu0  ;;  %v3045_v10 = vpack.c.bf16 %v3019_v56, %v3018_v35 }
 0x396   : > { %v2949_v23 = vmul.f32 %v4806_v51, %v6537_v63  ;;  %v4812_v25 = vadd.f32 %v6469_v28, %v2822_v58  ;;  %v3044_v26 = vpack.c.bf16 %v3017_v3, %v3016_v61 }
 0x397   : > { %v2990_v22 = vadd.f32 %v6543_v55, %v2951_v1  ;;  %v2952_v47 = vmul.f32 %v4809_v37, %v6537_v63 }
 0x398   : > { %v2988_v8 = vadd.f32 %v6543_v55, %v2949_v23  ;;  %v2950_v60 = vmul.f32 %v4812_v25, %v6537_v63  ;;  %4725 = vmatprep.mubr.bf16.mxu1 %v3044_v26 }
 0x399   : > { %v2991_v62 = vadd.f32 %v6543_v55, %v2952_v47  ;;  %4726 = vmatmul.mubr.bf16.gmra.mrb[152].mxu1 %v3045_v10  ;;  %v3022_v15 = vmax.f32 %v2990_v22, 0.0 }
 0x39a   : > { %v2989_v30 = vadd.f32 %v6543_v55, %v2950_v60  ;;  %v4687_v12 = vpop.f32.mrb[32].mxu0  ;;  %v3020_v16 = vmax.f32 %v2988_v8, 0.0 }
 0x39b   : > { %v3023_v40 = vmax.f32 %v2991_v62, 0.0  ;;  %v4815_v28 = vadd.f32 %v6496_v53, %v4687_v12  ;;  %v2835_v31 = vpop.f32.mrb[33].mxu0 }
 0x39c   : > { %v3021_v0 = vmax.f32 %v2989_v30, 0.0  ;;  %v4818_v33 = vadd.f32 %v6488_v17, %v2835_v31  ;;  %v4688_v20 = vpop.f32.mrb[34].mxu0 }
 0x39d   : > { %v2955_v21 = vmul.f32 %v4815_v28, %v6537_v63  ;;  %v4821_v9 = vadd.f32 %v6499_v52, %v4688_v20  ;;  %v2838_v7 = vpop.f32.mrb[35].mxu0  ;;  %v3047_v54 = vpack.c.bf16 %v3023_v40, %v3022_v15 }
 0x39e   : > { %v2953_v42 = vmul.f32 %v4818_v33, %v6537_v63  ;;  %v4824_v13 = vadd.f32 %v6491_v34, %v2838_v7  ;;  %v3046_v38 = vpack.c.bf16 %v3021_v0, %v3020_v16 }
 0x39f   : > { %v2994_v39 = vadd.f32 %v6543_v55, %v2955_v21  ;;  %v2956_v53 = vmul.f32 %v4821_v9, %v6537_v63 }
 0x3a0   : > { %v2992_v19 = vadd.f32 %v6543_v55, %v2953_v42  ;;  %v2954_v17 = vmul.f32 %v4824_v13, %v6537_v63  ;;  %4729 = vmatprep.mubr.bf16.mxu1 %v3046_v38 }
 0x3a1   : > { %v2995_v43 = vadd.f32 %v6543_v55, %v2956_v53  ;;  %4730 = vmatmul.mubr.bf16.gmra.mrb[156].mxu1 %v3047_v54  ;;  %v3026_v2 = vmax.f32 %v2994_v39, 0.0 }
 0x3a2   : > { %v2993_v52 = vadd.f32 %v6543_v55, %v2954_v17  ;;  %v4691_v59 = vpop.f32.mrb[36].mxu0  ;;  %v3024_v32 = vmax.f32 %v2992_v19, 0.0 }
 0x3a3   : > { %v3027_v46 = vmax.f32 %v2995_v43, 0.0  ;;  %v4827_v34 = vadd.f32 %v6512_v24, %v4691_v59  ;;  %v2851_v5 = vpop.f32.mrb[37].mxu0 }
 0x3a4   : > { %v3025_v4 = vmax.f32 %v2993_v52, 0.0  ;;  %v4830_v35 = vadd.f32 %v6504_v44, %v2851_v5  ;;  %v4692_v56 = vpop.f32.mrb[38].mxu0 }
 0x3a5   : > { %v2959_v29 = vmul.f32 %v4827_v34, %v6537_v63  ;;  %v4833_v27 = vadd.f32 %v6515_v50, %v4692_v56  ;;  %v2854_v61 = vpop.f32.mrb[39].mxu0  ;;  %v3049_v3 = vpack.c.bf16 %v3027_v46, %v3026_v2 }
 0x3a6   : > { %v2957_v51 = vmul.f32 %v4830_v35, %v6537_v63  ;;  %v4836_v14 = vadd.f32 %v6507_v41, %v2854_v61  ;;  %v3048_v1 = vpack.c.bf16 %v3025_v4, %v3024_v32  ;;  %v6648_v61 = vld [vmem:[%s6803_s9] ss:$0 sm:$0xff] }
 0x3a7   : > { %v2998_v37 = vadd.f32 %v6543_v55, %v2959_v29  ;;  %v2960_v24 = vmul.f32 %v4833_v27, %v6537_v63  ;;  %v6643_v27 = vld [vmem:[%s6802_s8] ss:$0 sm:$0xff] }
 0x3a8   : > { %v2996_v58 = vadd.f32 %v6543_v55, %v2957_v51  ;;  %v2958_v44 = vmul.f32 %v4836_v14, %v6537_v63  ;;  %4733 = vmatprep.mubr.bf16.mxu1 %v3048_v1 }
 0x3a9   : > { %v2999_v10 = vadd.f32 %v6543_v55, %v2960_v24  ;;  %4734 = vmatmul.mubr.bf16.gmra.mrb[160].mxu1 %v3049_v3  ;;  %v3030_v25 = vmax.f32 %v2998_v37, 0.0 }
 0x3aa   : > { %v2997_v50 = vadd.f32 %v6543_v55, %v2958_v44  ;;  %v4695_v23 = vpop.f32.mrb[40].mxu0  ;;  %v3028_v47 = vmax.f32 %v2996_v58, 0.0  ;;  %v6954_v44 = vld [vmem:[#allocation3_spill] sm:$0xff] }
 0x3ab   : > { %v3031_v26 = vmax.f32 %v2999_v10, 0.0  ;;  %v4839_v41 = vadd.f32 %v6522_v6, %v4695_v23  ;;  %v2867_v22 = vpop.f32.mrb[41].mxu0 }
 0x3ac   : > { %v3029_v8 = vmax.f32 %v2997_v50, 0.0  ;;  %v4842_v60 = vadd.f32 %v6518_v48, %v2867_v22  ;;  %v4696_v62 = vpop.f32.mrb[42].mxu0 }
 0x3ad   : > { %v2963_v30 = vmul.f32 %v4839_v41, %v6537_v63  ;;  %v4845_v12 = vadd.f32 %v6524_v11, %v4696_v62  ;;  %v2870_v15 = vpop.f32.mrb[43].mxu0  ;;  %v3051_v40 = vpack.c.bf16 %v3031_v26, %v3030_v25  ;;  %v6955_v41 = vld [vmem:[#allocation5_spill] sm:$0xff] }
 0x3ae   : > { %v2961_v28 = vmul.f32 %v4842_v60, %v6537_v63  ;;  %v4848_v31 = vadd.f32 %v6520_v36, %v2870_v15  ;;  %v3050_v16 = vpack.c.bf16 %v3029_v8, %v3028_v47  ;;  %v6956_v15 = vld [vmem:[#allocation7_spill] sm:$0xff] }
 0x3af   : > { %v3002_v0 = vadd.f32 %v6543_v55, %v2963_v30  ;;  %v2964_v6 = vmul.f32 %v4845_v12, %v6537_v63 }
 0x3b0   : > { %v3000_v33 = vadd.f32 %v6543_v55, %v2961_v28  ;;  %v2962_v48 = vmul.f32 %v4848_v31, %v6537_v63  ;;  %4737 = vmatprep.mubr.bf16.mxu1 %v3050_v16 }
 0x3b1   : > { %v3003_v20 = vadd.f32 %v6543_v55, %v2964_v6  ;;  %4738 = vmatmul.mubr.bf16.gmra.mrb[164].mxu1 %v3051_v40  ;;  %v3034_v9 = vmax.f32 %v3002_v0, 0.0  ;;  %v6957_v6 = vld [vmem:[#allocation9_spill] sm:$0xff] }
 0x3b2   : > { %v3001_v11 = vadd.f32 %v6543_v55, %v2962_v48  ;;  %v4699_v21 = vpop.f32.mrb[44].mxu0  ;;  %v3032_v42 = vmax.f32 %v3000_v33, 0.0 }
 0x3b3   : > { %v3035_v7 = vmax.f32 %v3003_v20, 0.0  ;;  %v4851_v36 = vadd.f32 %v6530_v18, %v4699_v21  ;;  %v2883_v54 = vpop.f32.mrb[45].mxu0 }
 0x3b4   : > { %v3033_v13 = vmax.f32 %v3001_v11, 0.0  ;;  %v4854_v38 = vadd.f32 %v6526_v57, %v2883_v54  ;;  %v4700_v39 = vpop.f32.mrb[46].mxu0 }
 0x3b5   : > { %v2967_v53 = vmul.f32 %v4851_v36, %v6537_v63  ;;  %v4857_v19 = vadd.f32 %v6532_v45, %v4700_v39  ;;  %v2886_v17 = vpop.f32.mrb[47].mxu0  ;;  %v3053_v43 = vpack.c.bf16 %v3035_v7, %v3034_v9  ;;  %v6958_v36 = vld [vmem:[#allocation11_spill] sm:$0xff] }
 0x3b6   : > { %v2965_v52 = vmul.f32 %v4854_v38, %v6537_v63  ;;  %v4860_v59 = vadd.f32 %v6528_v49, %v2886_v17  ;;  %v3052_v2 = vpack.c.bf16 %v3033_v13, %v3032_v42 }
 0x3b7   : > { %v3006_v46 = vadd.f32 %v6543_v55, %v2967_v53  ;;  %v2968_v18 = vmul.f32 %v4857_v19, %v6537_v63  ;;  %v6959_v53 = vld [vmem:[#allocation13_spill] sm:$0xff] }
 0x3b8   : > { %v3004_v34 = vadd.f32 %v6543_v55, %v2965_v52  ;;  %v2966_v57 = vmul.f32 %v4860_v59, %v6537_v63  ;;  %4741 = vmatprep.mubr.bf16.mxu1 %v3052_v2 }
 0x3b9   : > { %v3007_v5 = vadd.f32 %v6543_v55, %v2968_v18  ;;  %4742 = vmatmul.mubr.bf16.gmra.mrb[168].mxu1 %v3053_v43  ;;  %v3038_v32 = vmax.f32 %v3006_v46, 0.0  ;;  %v6960_v18 = vld [vmem:[#allocation15_spill] sm:$0xff] }
 0x3ba   : > { %v3005_v45 = vadd.f32 %v6543_v55, %v2966_v57  ;;  %v3036_v35 = vmax.f32 %v3004_v34, 0.0 }
 0x3bb   : > { %v3039_v4 = vmax.f32 %v3007_v5, 0.0  ;;  %v6961_v5 = vld [vmem:[#allocation17_spill] sm:$0xff] }
 0x3bc   : > { %v3037_v56 = vmax.f32 %v3005_v45, 0.0 }
 0x3bd   : > { %v3055_v49 = vpack.c.bf16 %v3039_v4, %v3038_v32 }
 0x3be   : > { %v3054_v29 = vpack.c.bf16 %v3037_v56, %v3036_v35 }
 0x3c0   : > { %4745 = vmatprep.mubr.bf16.mxu1 %v3054_v29 }
 0x3c1   : > { %4746 = vmatmul.mubr.bf16.gmra.mrb[172].mxu1 %v3055_v49 }
 0x45c   : > { %v4719_v63 = vpop.f32.mrb[144].mxu1 }
 0x45d   : > { %v3154_v55 = vpop.f32.mrb[145].mxu1  ;;  %v3290_v1 = vmul.f32 %v4719_v63, %v6643_v27 }
 0x45e   : > { %v3288_v3 = vmul.f32 %v6643_v27, %v3154_v55  ;;  %v4720_v51 = vpop.f32.mrb[146].mxu1 }
 0x45f   : > { %v3157_v14 = vpop.f32.mrb[147].mxu1  ;;  %v3329_v50 = vadd.f32 %v6648_v61, %v3290_v1  ;;  %v3291_v23 = vmul.f32 %v4720_v51, %v6643_v27  ;;  %v6962_v51 = vld [vmem:[#allocation19_spill] sm:$0xff] }
 0x460   : > { %v3327_v37 = vadd.f32 %v6648_v61, %v3288_v3  ;;  %v3289_v24 = vmul.f32 %v6643_v27, %v3157_v14 }
 0x461   : > { %v3330_v62 = vadd.f32 %v6648_v61, %v3291_v23  ;;  %v3361_v40 = vadd.f32 %v3329_v50, %v6956_v15  ;;  %v6963_v50 = vld [vmem:[#allocation4_spill] sm:$0xff] }
 0x462   : > { %v3328_v58 = vadd.f32 %v6648_v61, %v3289_v24  ;;  %v3359_v10 = vadd.f32 %v3327_v37, %v6954_v44 }
 0x463   : > { %v3393_v0 = vmax.f32 %v3361_v40, 0.0  ;;  %v3362_v33 = vadd.f32 %v3330_v62, %v6957_v6  ;;  %v6966_v6 = vld [vmem:[#allocation23_spill] sm:$0xff] }
 0x464   : > { %v4723_v25 = vpop.f32.mrb[148].mxu1  ;;  %v3391_v26 = vmax.f32 %v3359_v10, 0.0  ;;  %v3360_v22 = vadd.f32 %v3328_v58, %v6955_v41 }
 0x465   : > { %v3170_v47 = vpop.f32.mrb[149].mxu1  ;;  %v3294_v21 = vmul.f32 %v4723_v25, %v6643_v27  ;;  %v3394_v7 = vmax.f32 %v3362_v33, 0.0 }
 0x466   : > { %3423 = vxpose.xlu0.b32.start [1/16] %v3391_v26, 128  ;;  %v4724_v8 = vpop.f32.mrb[150].mxu1  ;;  %v3292_v30 = vmul.f32 %v6643_v27, %v3170_v47  ;;  %v3392_v12 = vmax.f32 %v3360_v22, 0.0 }
 0x467   : > { %v3173_v60 = vpop.f32.mrb[151].mxu1  ;;  %v3295_v42 = vmul.f32 %v4724_v8, %v6643_v27  ;;  %v3333_v13 = vadd.f32 %v6648_v61, %v3294_v21  ;;  %v6967_v21 = vld [vmem:[#allocation8_spill] sm:$0xff] }
 0x468   : > { %v3331_v28 = vadd.f32 %v6648_v61, %v3292_v30  ;;  %v3293_v31 = vmul.f32 %v6643_v27, %v3173_v60  ;;  %v6964_v60 = vld [vmem:[#allocation21_spill] sm:$0xff]  ;;  %v6965_v30 = vld [vmem:[#allocation6_spill] sm:$0xff] }
 0x469   : > { %v3334_v52 = vadd.f32 %v6648_v61, %v3295_v42  ;;  %v3365_v34 = vadd.f32 %v3333_v13, %v6960_v18  ;;  %v6969_v13 = vld [vmem:[#allocation10_spill] sm:$0xff] }
 0x46a   : > { %3424 = vxpose.xlu0.b32.cont [2/16] %v3392_v12, 128  ;;  %v3332_v9 = vadd.f32 %v6648_v61, %v3293_v31  ;;  %v3363_v54 = vadd.f32 %v3331_v28, %v6958_v36 }
 0x46b   : > { %v3366_v45 = vadd.f32 %v3334_v52, %v6961_v5  ;;  %v3397_v35 = vmax.f32 %v3365_v34, 0.0 }
 0x46c   : > { %v4727_v16 = vpop.f32.mrb[152].mxu1  ;;  %v3395_v39 = vmax.f32 %v3363_v54, 0.0  ;;  %v3364_v19 = vadd.f32 %v3332_v9, %v6959_v53  ;;  %v6968_v54 = vld [vmem:[#allocation25_spill] sm:$0xff] }
 0x46d   : > { %v3186_v48 = vpop.f32.mrb[153].mxu1  ;;  %v3298_v63 = vmul.f32 %v4727_v16, %v6643_v27  ;;  %v3398_v3 = vmax.f32 %v3366_v45, 0.0 }
 0x46e   : > { %3425 = vxpose.xlu0.b32.cont [3/16] %v3393_v0, 128  ;;  %v4728_v20 = vpop.f32.mrb[154].mxu1  ;;  %v3296_v59 = vmul.f32 %v6643_v27, %v3186_v48  ;;  %v3396_v46 = vmax.f32 %v3364_v19, 0.0 }
 0x46f   : > { %v3189_v11 = vpop.f32.mrb[155].mxu1  ;;  %v3299_v44 = vmul.f32 %v4728_v20, %v6643_v27  ;;  %v3337_v25 = vadd.f32 %v6648_v61, %v3298_v63 }
 0x470   : > { %v3335_v57 = vadd.f32 %v6648_v61, %v3296_v59  ;;  %v3297_v32 = vmul.f32 %v6643_v27, %v3189_v11 }
 0x471   : > { %v3338_v40 = vadd.f32 %v6648_v61, %v3299_v44  ;;  %v3369_v33 = vadd.f32 %v3337_v25, %v6966_v6 }
 0x472   : > { %3426 = vxpose.xlu0.b32.cont [4/16] %v3394_v7, 128  ;;  %v3367_v14 = vadd.f32 %v3335_v57, %v6962_v51  ;;  %v3336_v1 = vadd.f32 %v6648_v61, %v3297_v32  ;;  %v6970_v32 = vld [vmem:[#allocation27_spill] sm:$0xff]  ;;  %v6971_v51 = vld [vmem:[#allocation12_spill] sm:$0xff] }
 0x473   : > { %v3370_v42 = vadd.f32 %v3338_v40, %v6968_v54  ;;  %v3401_v52 = vmax.f32 %v3369_v33, 0.0  ;;  %v6976_v54 = vld [vmem:[#allocation33_spill] sm:$0xff] }
 0x474   : > { %v6670_v38 = vpop.f32.mrb[156].mxu1  ;;  %v3399_v41 = vmax.f32 %v3367_v14, 0.0  ;;  %v3368_v62 = vadd.f32 %v3336_v1, %v6964_v60 }
 0x475   : > { %v3202_v17 = vpop.f32.mrb[157].mxu1  ;;  %v3402_v45 = vmax.f32 %v3370_v42, 0.0 }
 0x476   : > { %3427 = vxpose.xlu0.b32.cont [5/16] %v3395_v39, 128  ;;  %v6673_v43 = vpop.f32.mrb[158].mxu1  ;;  %v3300_v28 = vmul.f32 %v6643_v27, %v3202_v17  ;;  %v3400_v20 = vmax.f32 %v3368_v62, 0.0 }
 0x477   : > { %v3205_v2 = vpop.f32.mrb[159].mxu1 }
 0x478   : > { %v3339_v7 = vadd.f32 %v6648_v61, %v3300_v28  ;;  %v3301_v36 = vmul.f32 %v6643_v27, %v3205_v2 }
 0x47a   : > { %3428 = vxpose.xlu0.b32.cont [6/16] %v3396_v46, 128  ;;  %v3302_v46 = vmul.f32 %v6670_v38, %v6643_v27  ;;  %v3340_v2 = vadd.f32 %v6648_v61, %v3301_v36 }
 0x47c   : > { %v4735_v4 = vpop.f32.mrb[160].mxu1 }
 0x47d   : > { %v3218_v56 = vpop.f32.mrb[161].mxu1  ;;  %v3306_v37 = vmul.f32 %v4735_v4, %v6643_v27  ;;  %v3371_v4 = vadd.f32 %v3339_v7, %v6970_v32  ;;  %v6982_v32 = vld [vmem:[#allocation28_spill] sm:$0xff] }
 0x47e   : > { %v3304_v49 = vmul.f32 %v6643_v27, %v3218_v56  ;;  %3429 = vxpose.xlu0.b32.cont [7/16] %v3397_v35, 128  ;;  %v4736_v29 = vpop.f32.mrb[162].mxu1 }
 0x47f   : > { %v3221_v55 = vpop.f32.mrb[163].mxu1  ;;  %v3307_v26 = vmul.f32 %v4736_v29, %v6643_v27  ;;  %v3345_v22 = vadd.f32 %v6648_v61, %v3306_v37  ;;  %v3341_v37 = vadd.f32 %v6648_v61, %v3302_v46 }
 0x480   : > { %v3343_v24 = vadd.f32 %v6648_v61, %v3304_v49  ;;  %v3305_v58 = vmul.f32 %v6643_v27, %v3221_v55 }
 0x481   : > { %v3346_v16 = vadd.f32 %v6648_v61, %v3307_v26  ;;  %v3377_v9 = vadd.f32 %v3345_v22, %v6967_v21  ;;  %v3403_v26 = vmax.f32 %v3371_v4, 0.0  ;;  %v6973_v22 = vld [vmem:[#allocation14_spill] sm:$0xff] }
 0x482   : > { %v3344_v10 = vadd.f32 %v6648_v61, %v3305_v58  ;;  %3430 = vxpose.xlu0.b32.cont [8/16] %v3398_v3, 128  ;;  %v3375_v23 = vadd.f32 %v3343_v24, %v6963_v50  ;;  %v3303_v24 = vmul.f32 %v6673_v43, %v6643_v27 }
 0x483   : > { %v3378_v39 = vadd.f32 %v3346_v16, %v6969_v13  ;;  %v3409_v59 = vmax.f32 %v3377_v9, 0.0  ;;  %v6977_v13 = vld [vmem:[#allocation18_spill] sm:$0xff] }
 0x484   : > { %v4739_v47 = vpop.f32.mrb[164].mxu1  ;;  %v3407_v8 = vmax.f32 %v3375_v23, 0.0  ;;  %v3376_v12 = vadd.f32 %v3344_v10, %v6965_v30  ;;  %v6972_v10 = vld [vmem:[#allocation29_spill] sm:$0xff]  ;;  %v3342_v43 = vadd.f32 %v6648_v61, %v3303_v24 }
 0x485   : > { %v3234_v15 = vpop.f32.mrb[165].mxu1  ;;  %v3310_v35 = vmul.f32 %v4739_v47, %v6643_v27  ;;  %v3410_v29 = vmax.f32 %v3378_v39, 0.0  ;;  %v3372_v50 = vadd.f32 %v3340_v2, %v6972_v10 }
 0x486   : > { %3431 = vxpose.xlu0.b32.cont [9/16] %v3399_v41, 128  ;;  %3455 = vxpose.xlu1.b32.start [1/16] %v3407_v8, 128  ;;  %v4740_v31 = vpop.f32.mrb[166].mxu1  ;;  %v3308_v48 = vmul.f32 %v6643_v27, %v3234_v15  ;;  %v3408_v11 = vmax.f32 %v3376_v12, 0.0  ;;  %v6974_v12 = vld [vmem:[#allocation31_spill] sm:$0xff]  ;;  %v3374_v42 = vadd.f32 %v3342_v43, %v6976_v54 }
 0x487   : > { %v3237_v0 = vpop.f32.mrb[167].mxu1  ;;  %v3311_v44 = vmul.f32 %v4740_v31, %v6643_v27  ;;  %v3349_v23 = vadd.f32 %v6648_v61, %v3310_v35  ;;  %v3373_v15 = vadd.f32 %v3341_v37, %v6974_v12 }
 0x488   : > { %v3347_v53 = vadd.f32 %v6648_v61, %v3308_v48  ;;  %v3309_v19 = vmul.f32 %v6643_v27, %v3237_v0  ;;  %v3404_v0 = vmax.f32 %v3372_v50, 0.0 }
 0x489   : > { %v3350_v40 = vadd.f32 %v6648_v61, %v3311_v44  ;;  %v3405_v7 = vmax.f32 %v3373_v15, 0.0 }
 0x48a   : > { %3432 = vxpose.xlu0.b32.cont [10/16] %v3400_v20, 128  ;;  %3456 = vxpose.xlu1.b32.cont [2/16] %v3408_v11, 128  ;;  %v3348_v63 = vadd.f32 %v6648_v61, %v3309_v19  ;;  %v3379_v14 = vadd.f32 %v3347_v53, %v6971_v51  ;;  %v6975_v20 = vld [vmem:[#allocation16_spill] sm:$0xff]  ;;  %v3406_v53 = vmax.f32 %v3374_v42, 0.0 }
 0x48b   : > { %v3381_v11 = vadd.f32 %v3349_v23, %v6975_v20  ;;  %v3382_v39 = vadd.f32 %v3350_v40, %v6977_v13 }
 0x48c   : > { %v4743_v17 = vpop.f32.mrb[168].mxu1  ;;  %v3411_v41 = vmax.f32 %v3379_v14, 0.0  ;;  %v3380_v47 = vadd.f32 %v3348_v63, %v6973_v22  ;;  %v6984_v63 = vld [vmem:[#allocation32_spill] sm:$0xff] }
 0x48d   : > { %v3314_v18 = vmul.f32 %v4743_v17, %v6643_v27  ;;  %v3250_v34 = vpop.f32.mrb[169].mxu1  ;;  %v3413_v36 = vmax.f32 %v3381_v11, 0.0  ;;  %v3414_v19 = vmax.f32 %v3382_v39, 0.0 }
 0x48e   : > { %v3312_v57 = vmul.f32 %v6643_v27, %v3250_v34  ;;  %3433 = vxpose.xlu0.b32.cont [11/16] %v3401_v52, 128  ;;  %3457 = vxpose.xlu1.b32.cont [3/16] %v3409_v59, 128  ;;  %v4744_v5 = vpop.f32.mrb[170].mxu1  ;;  %v3412_v48 = vmax.f32 %v3380_v47, 0.0  ;;  %v6979_v59 = vld [vmem:[#allocation22_spill] sm:$0xff] }
 0x48f   : > { %v3353_v56 = vadd.f32 %v6648_v61, %v3314_v18  ;;  %v3315_v49 = vmul.f32 %v4744_v5, %v6643_v27  ;;  %v3253_v38 = vpop.f32.mrb[171].mxu1  ;;  %v6980_v18 = vld [vmem:[#allocation24_spill] sm:$0xff] }
 0x490   : > { %v3351_v55 = vadd.f32 %v6648_v61, %v3312_v57  ;;  %v3313_v3 = vmul.f32 %v6643_v27, %v3253_v38  ;;  %v6981_v57 = vld [vmem:[#allocation26_spill] sm:$0xff] }
 0x491   : > { %v3354_v1 = vadd.f32 %v6648_v61, %v3315_v49  ;;  %v3385_v34 = vadd.f32 %v3353_v56, %v6980_v18  ;;  %v6983_v49 = vld [vmem:[#allocation30_spill] sm:$0xff] }
 0x492   : > { %v3352_v58 = vadd.f32 %v6648_v61, %v3313_v3  ;;  %3434 = vxpose.xlu0.b32.cont [12/16] %v3402_v45, 128  ;;  %3458 = vxpose.xlu1.b32.cont [4/16] %v3410_v29, 128  ;;  %v6985_v56 = vld [vmem:[#allocation34_spill] sm:$0xff] }
 0x493   : > { %v3417_v2 = vmax.f32 %v3385_v34, 0.0  ;;  %v3386_v5 = vadd.f32 %v3354_v1, %v6981_v57 }
 0x494   : > { %v4747_v25 = vpop.f32.mrb[172].mxu1  ;;  %v3384_v46 = vadd.f32 %v3352_v58, %v6979_v59 }
 0x495   : > { %v3318_v8 = vmul.f32 %v4747_v25, %v6643_v27  ;;  %v3266_v60 = vpop.f32.mrb[173].mxu1  ;;  %v3418_v45 = vmax.f32 %v3386_v5, 0.0 }
 0x496   : > { %v3316_v62 = vmul.f32 %v6643_v27, %v3266_v60  ;;  %3435 = vxpose.xlu0.b32.cont [13/16] %v3403_v26, 128  ;;  %3459 = vxpose.xlu1.b32.cont [5/16] %v3411_v41, 128  ;;  %v4748_v30 = vpop.f32.mrb[174].mxu1 }
 0x497   : > { %v3357_v28 = vadd.f32 %v6648_v61, %v3318_v8  ;;  %v3319_v31 = vmul.f32 %v4748_v30, %v6643_v27  ;;  %v3269_v16 = vpop.f32.mrb[175].mxu1 }
 0x498   : > { %v3355_v6 = vadd.f32 %v6648_v61, %v3316_v62  ;;  %v3317_v33 = vmul.f32 %v6643_v27, %v3269_v16  ;;  %v6978_v27 = vld [vmem:[#allocation20_spill] sm:$0xff] }
 0x499   : > { %v3358_v21 = vadd.f32 %v6648_v61, %v3319_v31  ;;  %v3383_v17 = vadd.f32 %v3351_v55, %v6978_v27  ;;  %v3389_v55 = vadd.f32 %v3357_v28, %v6984_v63 }
 0x49a   : > { %v3356_v9 = vadd.f32 %v6648_v61, %v3317_v33  ;;  %3436 = vxpose.xlu0.b32.cont [14/16] %v3404_v0, 128  ;;  %3460 = vxpose.xlu1.b32.cont [6/16] %v3412_v48, 128  ;;  %v3416_v61 = vmax.f32 %v3384_v46, 0.0  ;;  %v3387_v4 = vadd.f32 %v3355_v6, %v6982_v32 }
 0x49b   : > { %v3415_v52 = vmax.f32 %v3383_v17, 0.0  ;;  %v3421_v3 = vmax.f32 %v3389_v55, 0.0  ;;  %v3390_v51 = vadd.f32 %v3358_v21, %v6985_v56 }
 0x49c   : > { %v3419_v35 = vmax.f32 %v3387_v4, 0.0  ;;  %v3388_v38 = vadd.f32 %v3356_v9, %v6983_v49 }
 0x49d   : > { %v3422_v14 = vmax.f32 %v3390_v51, 0.0 }
 0x49e   : > { %3437 = vxpose.xlu0.b32.cont [15/16] %v3405_v7, 128  ;;  %3461 = vxpose.xlu1.b32.cont [7/16] %v3413_v36, 128  ;;  %v3420_v29 = vmax.f32 %v3388_v38, 0.0 }
 0x4a2   : > { %3438 = vxpose.xlu0.b32.end [16/16] %v3406_v53, 128  ;;  %3462 = vxpose.xlu1.b32.cont [8/16] %v3414_v19, 128 }
 0x4a6   : > { %3463 = vxpose.xlu1.b32.cont [9/16] %v3415_v52, 128 }
 0x4aa   : > { %3464 = vxpose.xlu1.b32.cont [10/16] %v3416_v61, 128 }
 0x4ae   : > { %3465 = vxpose.xlu1.b32.cont [11/16] %v3417_v2, 128 }
 0x4b2   : > { %3466 = vxpose.xlu1.b32.cont [12/16] %v3418_v45, 128 }
 0x4b6   : > { %3467 = vxpose.xlu1.b32.cont [13/16] %v3419_v35, 128 }
 0x4ba   : > { %3468 = vxpose.xlu1.b32.cont [14/16] %v3420_v29, 128 }
 0x4be   : > { %3469 = vxpose.xlu1.b32.cont [15/16] %v3421_v3, 128 }
 0x4c2   : > { %3470 = vxpose.xlu1.b32.end [16/16] %v3422_v14, 128 }
 0x4e6   : > { %v3439_v1 = vpop.trf.xlu0 }
 0x4e7   : > { %3487 = vst [vmem:[%s6757_s22] sm:$0xff] %v3439_v1 }
 0x4ea   : > { %v3440_v37 = vpop.trf.xlu0 }
 0x4eb   : > { %3489 = vst [vmem:[%s6757_s22 + $0x10] sm:$0xff] %v3440_v37 }
 0x4ee   : > { %v3441_v24 = vpop.trf.xlu0 }
 0x4ef   : > { %3491 = vst [vmem:[%s6757_s22 + $0x20] sm:$0xff] %v3441_v24 }
 0x4f2   : > { %v3442_v58 = vpop.trf.xlu0 }
 0x4f3   : > { %3493 = vst [vmem:[%s6757_s22 + $0x30] sm:$0xff] %v3442_v58 }
 0x4f6   : > { %v3443_v44 = vpop.trf.xlu0 }
 0x4f7   : > { %3495 = vst [vmem:[%s6757_s22 + $0x40] sm:$0xff] %v3443_v44 }
 0x4fa   : > { %v3444_v10 = vpop.trf.xlu0 }
 0x4fb   : > { %3497 = vst [vmem:[%s6757_s22 + $0x50] sm:$0xff] %v3444_v10 }
 0x4fe   : > { %v3445_v50 = vpop.trf.xlu0 }
 0x4ff   : > { %3499 = vst [vmem:[%s6757_s22 + $0x60] sm:$0xff] %v3445_v50 }
 0x502   : > { %v3446_v23 = vpop.trf.xlu0 }
 0x503   : > { %3501 = vst [vmem:[%s6757_s22 + $0x70] sm:$0xff] %v3446_v23 }
 0x506   : > { %v3471_v25 = vpop.trf.xlu1  ;;  %v3447_v26 = vpop.trf.xlu0 }
 0x507   : > { %3488 = vst [vmem:[%s6757_s22 + $0x8] sm:$0xff] %v3471_v25  ;;  %3503 = vst [vmem:[%s6757_s22 + $0x80] sm:$0xff] %v3447_v26 }
 0x50a   : > { %v3472_v41 = vpop.trf.xlu1  ;;  %v3448_v22 = vpop.trf.xlu0 }
 0x50b   : > { %3490 = vst [vmem:[%s6757_s22 + $0x18] sm:$0xff] %v3472_v41  ;;  %3505 = vst [vmem:[%s6757_s22 + $0x90] sm:$0xff] %v3448_v22 }
 0x50e   : > { %v3473_v47 = vpop.trf.xlu1  ;;  %v3449_v8 = vpop.trf.xlu0 }
 0x50f   : > { %3492 = vst [vmem:[%s6757_s22 + $0x28] sm:$0xff] %v3473_v47  ;;  %3507 = vst [vmem:[%s6757_s22 + $0xa0] sm:$0xff] %v3449_v8 }
 0x512   : > { %v3474_v60 = vpop.trf.xlu1  ;;  %v3450_v43 = vpop.trf.xlu0 }
 0x513   : > { %3494 = vst [vmem:[%s6757_s22 + $0x38] sm:$0xff] %v3474_v60  ;;  %3509 = vst [vmem:[%s6757_s22 + $0xb0] sm:$0xff] %v3450_v43 }
 0x516   : > { %v3475_v62 = vpop.trf.xlu1  ;;  %v3451_v30 = vpop.trf.xlu0 }
 0x517   : > { %3496 = vst [vmem:[%s6757_s22 + $0x48] sm:$0xff] %v3475_v62  ;;  %3511 = vst [vmem:[%s6757_s22 + $0xc0] sm:$0xff] %v3451_v30 }
 0x51a   : > { %v3476_v12 = vpop.trf.xlu1  ;;  %v3452_v15 = vpop.trf.xlu0 }
 0x51b   : > { %3498 = vst [vmem:[%s6757_s22 + $0x58] sm:$0xff] %v3476_v12  ;;  %3513 = vst [vmem:[%s6757_s22 + $0xd0] sm:$0xff] %v3452_v15 }
 0x51e   : > { %v3477_v40 = vpop.trf.xlu1  ;;  %v3453_v28 = vpop.trf.xlu0 }
 0x51f   : > { %3500 = vst [vmem:[%s6757_s22 + $0x68] sm:$0xff] %v3477_v40  ;;  %3515 = vst [vmem:[%s6757_s22 + $0xe0] sm:$0xff] %v3453_v28 }
 0x522   : > { %v3478_v31 = vpop.trf.xlu1  ;;  %v3454_v16 = vpop.trf.xlu0 }
 0x523   : > { %3502 = vst [vmem:[%s6757_s22 + $0x78] sm:$0xff] %v3478_v31  ;;  %3517 = vst [vmem:[%s6757_s22 + $0xf0] sm:$0xff] %v3454_v16 }
 0x526   : > { %v3479_v0 = vpop.trf.xlu1 }
 0x527   : > { %3504 = vst [vmem:[%s6757_s22 + $0x88] sm:$0xff] %v3479_v0 }
 0x52a   : > { %v3480_v6 = vpop.trf.xlu1 }
 0x52b   : > { %3506 = vst [vmem:[%s6757_s22 + $0x98] sm:$0xff] %v3480_v6 }
 0x52e   : > { %v3481_v33 = vpop.trf.xlu1 }
 0x52f   : > { %3508 = vst [vmem:[%s6757_s22 + $0xa8] sm:$0xff] %v3481_v33 }
 0x532   : > { %v3482_v48 = vpop.trf.xlu1 }
 0x533   : > { %3510 = vst [vmem:[%s6757_s22 + $0xb8] sm:$0xff] %v3482_v48 }
 0x536   : > { %v3483_v20 = vpop.trf.xlu1 }
 0x537   : > { %3512 = vst [vmem:[%s6757_s22 + $0xc8] sm:$0xff] %v3483_v20 }
 0x53a   : > { %v3484_v11 = vpop.trf.xlu1 }
 0x53b   : > { %3514 = vst [vmem:[%s6757_s22 + $0xd8] sm:$0xff] %v3484_v11 }
 0x53e   : > { %v3485_v21 = vpop.trf.xlu1 }
 0x53f   : > { %3516 = vst [vmem:[%s6757_s22 + $0xe8] sm:$0xff] %v3485_v21 }
 0x542   : > { %v3486_v9 = vpop.trf.xlu1 }
 0x543   : > { %3518 = vst [vmem:[%s6757_s22 + $0xf8] sm:$0xff] %v3486_v9 }
 0x544 PF: > { %s20_s13 = sadd.s32 1, %s5029_s13  }
 0x545   : > { %p17_p4 = scmp.ge.s32.totalorder %s20_s13, 4  }
 0x547   :  { %19 = sbr.rel (!%p17_p4) target bundleno = 1 (0x1), region = 95 }

</bundles_post_ra>
